<compile_context>
chip_gen: v7x
topology: tpu7x:2x2x1
jax: 0.10.0
libtpu: 0.0.40
codegen_flags: <defaults>
</compile_context>

<pallas_src>
import jax
import jax.numpy as jnp
from jax.experimental import pallas as pl
from jax.experimental.pallas import tpu as pltpu

IN_DIM = 784
OUT_PAD = 896          # 7 * 128: lane-dense padded decoder output width
HID = 512
Z_SIZE = 4
CLS_SIZE = 1           # classifier_size (rotation head input width)
HEAD_W = 128           # lane-dense packed width for the mu || logvar || rot slab
TB_MAX = 256           # batch tile: fills the 256-row MXU on v6e/v7x, 2x128 on v5e


def _round_up(n, m):
    return (n + m - 1) // m * m


def _rotvae_kernel(x_ref, w1_ref, b1_ref, wh_ref, bh_ref, w4_ref, b4_ref,
                   w5_ref, b5_ref, w6b6_ref, noise_ref,
                   xo_ref, small_ref):
    # ---- encoder: h1 = relu(x @ W1 + b1); bf16 operands, f32 accumulation ----
    h1 = jnp.dot(x_ref[...], w1_ref[...],
                 preferred_element_type=jnp.float32) + b1_ref[...]
    h1 = jnp.maximum(h1, 0.0)

    # ---- fused mu||logvar heads: W2 and W3 packed into one (512, 128) weight.
    # Columns [0:Z) -> mu, [Z:2Z) -> logvar; remaining columns are zero-padded
    # (and therefore stay exactly 0.0 in f32).
    heads = jnp.dot(h1, wh_ref[...],
                    preferred_element_type=jnp.float32) + bh_ref[...]
    mu = heads[:, :Z_SIZE]
    logvar = heads[:, Z_SIZE:2 * Z_SIZE]

    # ---- reparameterization (uniform noise, matching torch.rand_like) ----
    std = jnp.exp(0.5 * logvar)
    z = mu + noise_ref[...] * std

    # ---- rotation head: 1x1 linear done on the VPU with SMEM scalars ----
    # (specialized for classifier_size == 1; w6b6_ref = [w6, b6])
    rot = z[:, :CLS_SIZE] * w6b6_ref[0] + w6b6_ref[1]          # (TB, 1)

    # ---- decoder ----
    h3 = jnp.dot(z, w4_ref[...], preferred_element_type=jnp.float32) + b4_ref[...]
    h3 = jnp.maximum(h3, 0.0)
    logits = jnp.dot(h3.astype(w5_ref.dtype), w5_ref[...],
                     preferred_element_type=jnp.float32) + b5_ref[...]
    xo_ref[...] = jax.nn.sigmoid(logits).astype(xo_ref.dtype)

    # ---- lane-dense packed small output: cols [0:Z)=mu, [Z:2Z)=logvar, [2Z]=rot.
    # heads[:, 2Z:] is exactly zero, so adding rot on column 2Z places it cleanly.
    col = jax.lax.broadcasted_iota(jnp.int32, heads.shape, dimension=1)
    small = heads + jnp.where(col == 2 * Z_SIZE, rot, 0.0)
    small_ref[...] = small.astype(small_ref.dtype)


@jax.jit
def rotvae_forward(x, p, noise):
    """RotVAE forward in one Pallas kernel.

    x:      (B, 784) float32
    noise:  (B, z_size) float32 uniform [0,1)
    p:      kernel-ready params from prepare_params()
    returns (x_, mu, logvar, rot_)
    """
    B = x.shape[0]
    TB = TB_MAX if B >= TB_MAX else _round_up(B, 8)
    B_pad = _round_up(B, TB)
    if B_pad != B:
        x = jnp.pad(x, ((0, B_pad - B), (0, 0)))
        noise = jnp.pad(noise, ((0, B_pad - B), (0, 0)))
    x = x.astype(jnp.bfloat16)

    grid = (B_pad // TB,)
    batch_map = lambda i: (i, 0)
    const_map = lambda i: (0, 0)

    in_specs = [
        pl.BlockSpec((TB, IN_DIM), batch_map),              # x (bf16)
        pl.BlockSpec((IN_DIM, HID), const_map),             # W1 (bf16)
        pl.BlockSpec((1, HID), const_map),                  # b1
        pl.BlockSpec((HID, HEAD_W), const_map),             # W2||W3 padded to 128
        pl.BlockSpec((1, HEAD_W), const_map),               # b2||b3 padded to 128
        pl.BlockSpec((Z_SIZE, HID), const_map),             # W4
        pl.BlockSpec((1, HID), const_map),                  # b4
        pl.BlockSpec((HID, OUT_PAD), const_map),            # W5 padded to 896 (bf16)
        pl.BlockSpec((1, OUT_PAD), const_map),              # b5 padded to 896
        pl.BlockSpec(memory_space=pltpu.MemorySpace.SMEM),  # [w6, b6] SMEM scalars
        pl.BlockSpec((TB, Z_SIZE), batch_map),              # noise
    ]
    out_specs = (
        pl.BlockSpec((TB, OUT_PAD), batch_map),             # x_ (padded lanes)
        pl.BlockSpec((TB, HEAD_W), batch_map),              # packed mu|logvar|rot
    )
    out_shape = (
        jax.ShapeDtypeStruct((B_pad, OUT_PAD), jnp.float32),
        jax.ShapeDtypeStruct((B_pad, HEAD_W), jnp.float32),
    )

    flops = 2 * B_pad * (IN_DIM * HID + HID * HEAD_W + Z_SIZE * HID + HID * OUT_PAD)
    transcendentals = B_pad * (OUT_PAD + Z_SIZE)
    bytes_accessed = (
        B_pad * IN_DIM * 2 + B_pad * Z_SIZE * 4             # x (bf16) + noise
        + B_pad * (OUT_PAD + HEAD_W) * 4                    # outputs
        + IN_DIM * HID * 2 + HID * OUT_PAD * 2              # bf16 weights
        + HID * HEAD_W * 4 + Z_SIZE * HID * 4               # f32 weights
        + (2 * HID + HEAD_W + OUT_PAD) * 4 + 2 * 4)         # biases + scalars

    xo_pad, small = pl.pallas_call(
        _rotvae_kernel,
        out_shape=out_shape,
        grid=grid,
        in_specs=in_specs,
        out_specs=out_specs,
        compiler_params=pltpu.CompilerParams(
            dimension_semantics=("parallel",),
            vmem_limit_bytes=32 * 1024 * 1024),
        cost_estimate=pl.CostEstimate(
            flops=flops,
            transcendentals=transcendentals,
            bytes_accessed=bytes_accessed),
    )(x, p["w1"], p["b1"], p["w_heads"], p["b_heads"], p["w4"], p["b4"],
      p["w5"], p["b5"], p["w6b6"], noise)

    x_rec = xo_pad[:B, :IN_DIM]
    mu = small[:B, :Z_SIZE]
    logvar = small[:B, Z_SIZE:2 * Z_SIZE]
    rot = small[:B, 2 * Z_SIZE:2 * Z_SIZE + 1]
    return x_rec, mu, logvar, rot


def init_params(key):
    """PyTorch nn.Linear-style init (U[-1/sqrt(fan_in), 1/sqrt(fan_in)]).

    Weights stored transposed relative to PyTorch: (in, out). Biases: (1, out).
    """
    dims = {
        "1": (IN_DIM, HID),
        "2": (HID, Z_SIZE),
        "3": (HID, Z_SIZE),
        "4": (Z_SIZE, HID),
        "5": (HID, IN_DIM),
        "6": (CLS_SIZE, 1),
    }
    params = {}
    for name, (fan_in, fan_out) in dims.items():
        key, kw, kb = jax.random.split(key, 3)
        bound = 1.0 / jnp.sqrt(jnp.float32(fan_in))
        params[f"w{name}"] = jax.random.uniform(
            kw, (fan_in, fan_out), jnp.float32, minval=-bound, maxval=bound)
        params[f"b{name}"] = jax.random.uniform(
            kb, (1, fan_out), jnp.float32, minval=-bound, maxval=bound)
    return params


def prepare_params(params):
    """Repack raw (in,out)/(1,out) params into kernel-ready arrays (do once)."""
    z2 = 2 * Z_SIZE
    w_heads = jnp.zeros((HID, HEAD_W), jnp.float32)
    w_heads = w_heads.at[:, :Z_SIZE].set(params["w2"])
    w_heads = w_heads.at[:, Z_SIZE:z2].set(params["w3"])
    b_heads = jnp.zeros((1, HEAD_W), jnp.float32)
    b_heads = b_heads.at[:, :Z_SIZE].set(params["b2"])
    b_heads = b_heads.at[:, Z_SIZE:z2].set(params["b3"])

    w5_pad = jnp.zeros((HID, OUT_PAD), jnp.bfloat16)
    w5_pad = w5_pad.at[:, :IN_DIM].set(params["w5"].astype(jnp.bfloat16))
    b5_pad = jnp.zeros((1, OUT_PAD), jnp.float32)
    b5_pad = b5_pad.at[:, :IN_DIM].set(params["b5"])

    # TODO(synk): rotation head is specialized for classifier_size == 1 (the
    # module default); a larger classifier_size would need a small dot instead.
    w6b6 = jnp.array([params["w6"][0, 0], params["b6"][0, 0]], jnp.float32)

    return {
        "w1": params["w1"].astype(jnp.bfloat16),
        "b1": params["b1"],
        "w_heads": w_heads,
        "b_heads": b_heads,
        "w4": params["w4"],
        "b4": params["b4"],
        "w5": w5_pad,
        "b5": b5_pad,
        "w6b6": w6b6,
    }


def reference_forward(x, params, noise):
    """Pure-JAX f32 reference matching the PyTorch module semantics."""
    h1 = jax.nn.relu(x @ params["w1"] + params["b1"])
    mu = h1 @ params["w2"] + params["b2"]
    logvar = h1 @ params["w3"] + params["b3"]
    std = jnp.exp(0.5 * logvar)
    z = mu + noise * std
    rot = z[:, :CLS_SIZE] @ params["w6"] + params["b6"]
    h3 = jax.nn.relu(z @ params["w4"] + params["b4"])
    x_rec = jax.nn.sigmoid(h3 @ params["w5"] + params["b5"])
    return x_rec, mu, logvar, rot


if __name__ == "__main__":
    key = jax.random.PRNGKey(0)
    key, kx, kn, kp = jax.random.split(key, 4)

    B = 8
    x = jax.random.uniform(kx, (B, IN_DIM), jnp.float32)       # MNIST-like pixels
    noise = jax.random.uniform(kn, (B, Z_SIZE), jnp.float32)   # torch.rand_like noise
    params = init_params(kp)
    prepped = prepare_params(params)

    outs = rotvae_forward(x, prepped, noise)
    outs = jax.block_until_ready(outs)
    x_rec, mu, logvar, rot = outs

    # Check against the f32 reference; tolerance loosened for the bf16 W1/W5 matmuls.
    ref = reference_forward(x, params, noise)
    for got, want in zip(outs, ref):
        assert got.shape == want.shape, (got.shape, want.shape)
        assert jnp.allclose(got, want, atol=3e-2, rtol=3e-2), "mismatch vs reference"

    print("KERNEL_OK")
</pallas_src>

<mosaic_0001>
module attributes {stable_mosaic.version = 11 : i64} {
  func.func @_rotvae_kernel(%arg0: i32, %arg1: memref<8x784xbf16, #tpu.memory_space<vmem>>, %arg2: memref<784x512xbf16, #tpu.memory_space<vmem>>, %arg3: memref<1x512xf32, #tpu.memory_space<vmem>>, %arg4: memref<512x128xf32, #tpu.memory_space<vmem>>, %arg5: memref<1x128xf32, #tpu.memory_space<vmem>>, %arg6: memref<4x512xf32, #tpu.memory_space<vmem>>, %arg7: memref<1x512xf32, #tpu.memory_space<vmem>>, %arg8: memref<512x896xbf16, #tpu.memory_space<vmem>>, %arg9: memref<1x896xf32, #tpu.memory_space<vmem>>, %arg10: memref<2xf32, #tpu.memory_space<smem>>, %arg11: memref<8x4xf32, #tpu.memory_space<vmem>>, %arg12: memref<8x896xf32, #tpu.memory_space<vmem>>, %arg13: memref<8x128xf32, #tpu.memory_space<vmem>>) attributes {dimension_semantics = [#tpu.dimension_semantics<parallel>], iteration_bounds = array<i64: 1>, scalar_prefetch = 0 : i64, scratch_operands = 0 : i64, tpu.core_type = #tpu.core_type<tc>, window_params = [{transform_indices = @transform_0, window_bounds = array<i64: 8, 784>}, {pipeline_mode = #tpu.pipeline_mode<synchronous>, transform_indices = @transform_1, window_bounds = array<i64: 784, 512>}, {pipeline_mode = #tpu.pipeline_mode<synchronous>, transform_indices = @transform_2, window_bounds = array<i64: 1, 512>}, {pipeline_mode = #tpu.pipeline_mode<synchronous>, transform_indices = @transform_3, window_bounds = array<i64: 512, 128>}, {pipeline_mode = #tpu.pipeline_mode<synchronous>, transform_indices = @transform_4, window_bounds = array<i64: 1, 128>}, {pipeline_mode = #tpu.pipeline_mode<synchronous>, transform_indices = @transform_5, window_bounds = array<i64: 4, 512>}, {pipeline_mode = #tpu.pipeline_mode<synchronous>, transform_indices = @transform_6, window_bounds = array<i64: 1, 512>}, {pipeline_mode = #tpu.pipeline_mode<synchronous>, transform_indices = @transform_7, window_bounds = array<i64: 512, 896>}, {pipeline_mode = #tpu.pipeline_mode<synchronous>, transform_indices = @transform_8, window_bounds = array<i64: 1, 896>}, {transform_indices = @transform_9, window_bounds = array<i64: 2>}, {transform_indices = @transform_10, window_bounds = array<i64: 8, 4>}, {transform_indices = @transform_11, window_bounds = array<i64: 8, 896>}, {transform_indices = @transform_12, window_bounds = array<i64: 8, 128>}]} {
    %c0 = arith.constant 0 : index
    %c0_0 = arith.constant 0 : index
    %0 = vector.load %arg1[%c0, %c0_0] : memref<8x784xbf16, #tpu.memory_space<vmem>>, vector<8x784xbf16>
    %c0_1 = arith.constant 0 : index
    %c0_2 = arith.constant 0 : index
    %1 = vector.load %arg2[%c0_1, %c0_2] : memref<784x512xbf16, #tpu.memory_space<vmem>>, vector<784x512xbf16>
    %cst = arith.constant dense<0.000000e+00> : vector<8x512xf32>
    %2 = tpu.matmul %0, %1, %cst {dimension_numbers = #tpu.dot_dimension_numbers<[1], [0], [0], [1], [0, 0, 1, 1], [], []>} : vector<8x784xbf16>, vector<784x512xbf16>, vector<8x512xf32> -> vector<8x512xf32>
    %c0_3 = arith.constant 0 : index
    %c0_4 = arith.constant 0 : index
    %3 = vector.load %arg3[%c0_3, %c0_4] : memref<1x512xf32, #tpu.memory_space<vmem>>, vector<1x512xf32>
    %4 = vector.broadcast %3 : vector<1x512xf32> to vector<8x512xf32>
    %5 = arith.addf %2, %4 : vector<8x512xf32>
    %cst_5 = arith.constant 0.000000e+00 : f32
    %6 = vector.broadcast %cst_5 : f32 to vector<8x512xf32>
    %7 = arith.maximumf %5, %6 : vector<8x512xf32>
    %c0_6 = arith.constant 0 : index
    %c0_7 = arith.constant 0 : index
    %8 = vector.load %arg4[%c0_6, %c0_7] : memref<512x128xf32, #tpu.memory_space<vmem>>, vector<512x128xf32>
    %cst_8 = arith.constant dense<0.000000e+00> : vector<8x128xf32>
    %9 = tpu.matmul %7, %8, %cst_8 {dimension_numbers = #tpu.dot_dimension_numbers<[1], [0], [0], [1], [0, 0, 1, 1], [], []>} : vector<8x512xf32>, vector<512x128xf32>, vector<8x128xf32> -> vector<8x128xf32>
    %c0_9 = arith.constant 0 : index
    %c0_10 = arith.constant 0 : index
    %10 = vector.load %arg5[%c0_9, %c0_10] : memref<1x128xf32, #tpu.memory_space<vmem>>, vector<1x128xf32>
    %11 = vector.broadcast %10 : vector<1x128xf32> to vector<8x128xf32>
    %12 = arith.addf %9, %11 : vector<8x128xf32>
    %13 = vector.extract_strided_slice %12 {offsets = [0, 0], sizes = [8, 4], strides = [1, 1]} : vector<8x128xf32> to vector<8x4xf32>
    %14 = vector.extract_strided_slice %12 {offsets = [0, 4], sizes = [8, 4], strides = [1, 1]} : vector<8x128xf32> to vector<8x4xf32>
    %cst_11 = arith.constant 5.000000e-01 : f32
    %15 = vector.broadcast %cst_11 : f32 to vector<8x4xf32>
    %16 = arith.mulf %15, %14 : vector<8x4xf32>
    %17 = math.exp %16 : vector<8x4xf32>
    %c0_12 = arith.constant 0 : index
    %c0_13 = arith.constant 0 : index
    %18 = vector.load %arg11[%c0_12, %c0_13] : memref<8x4xf32, #tpu.memory_space<vmem>>, vector<8x4xf32>
    %19 = arith.mulf %18, %17 : vector<8x4xf32>
    %20 = arith.addf %13, %19 : vector<8x4xf32>
    %21 = vector.extract_strided_slice %20 {offsets = [0, 0], sizes = [8, 1], strides = [1, 1]} : vector<8x4xf32> to vector<8x1xf32>
    %c0_14 = arith.constant 0 : index
    %22 = memref.load %arg10[%c0_14] : memref<2xf32, #tpu.memory_space<smem>>
    %23 = vector.broadcast %22 : f32 to vector<8x1xf32>
    %24 = arith.mulf %21, %23 : vector<8x1xf32>
    %c1 = arith.constant 1 : index
    %25 = memref.load %arg10[%c1] : memref<2xf32, #tpu.memory_space<smem>>
    %26 = vector.broadcast %25 : f32 to vector<8x1xf32>
    %27 = arith.addf %24, %26 : vector<8x1xf32>
    %c0_15 = arith.constant 0 : index
    %c0_16 = arith.constant 0 : index
    %28 = vector.load %arg6[%c0_15, %c0_16] : memref<4x512xf32, #tpu.memory_space<vmem>>, vector<4x512xf32>
    %cst_17 = arith.constant dense<0.000000e+00> : vector<8x512xf32>
    %29 = tpu.matmul %20, %28, %cst_17 {dimension_numbers = #tpu.dot_dimension_numbers<[1], [0], [0], [1], [0, 0, 1, 1], [], []>} : vector<8x4xf32>, vector<4x512xf32>, vector<8x512xf32> -> vector<8x512xf32>
    %c0_18 = arith.constant 0 : index
    %c0_19 = arith.constant 0 : index
    %30 = vector.load %arg7[%c0_18, %c0_19] : memref<1x512xf32, #tpu.memory_space<vmem>>, vector<1x512xf32>
    %31 = vector.broadcast %30 : vector<1x512xf32> to vector<8x512xf32>
    %32 = arith.addf %29, %31 : vector<8x512xf32>
    %cst_20 = arith.constant 0.000000e+00 : f32
    %33 = vector.broadcast %cst_20 : f32 to vector<8x512xf32>
    %34 = arith.maximumf %32, %33 : vector<8x512xf32>
    %35 = arith.truncf %34 : vector<8x512xf32> to vector<8x512xbf16>
    %c0_21 = arith.constant 0 : index
    %c0_22 = arith.constant 0 : index
    %36 = vector.load %arg8[%c0_21, %c0_22] : memref<512x896xbf16, #tpu.memory_space<vmem>>, vector<512x896xbf16>
    %cst_23 = arith.constant dense<0.000000e+00> : vector<8x896xf32>
    %37 = tpu.matmul %35, %36, %cst_23 {dimension_numbers = #tpu.dot_dimension_numbers<[1], [0], [0], [1], [0, 0, 1, 1], [], []>} : vector<8x512xbf16>, vector<512x896xbf16>, vector<8x896xf32> -> vector<8x896xf32>
    %c0_24 = arith.constant 0 : index
    %c0_25 = arith.constant 0 : index
    %38 = vector.load %arg9[%c0_24, %c0_25] : memref<1x896xf32, #tpu.memory_space<vmem>>, vector<1x896xf32>
    %39 = vector.broadcast %38 : vector<1x896xf32> to vector<8x896xf32>
    %40 = arith.addf %37, %39 : vector<8x896xf32>
    %41 = arith.negf %40 : vector<8x896xf32>
    %42 = math.exp %41 : vector<8x896xf32>
    %cst_26 = arith.constant 1.000000e+00 : f32
    %43 = vector.broadcast %cst_26 : f32 to vector<8x896xf32>
    %44 = arith.addf %43, %42 : vector<8x896xf32>
    %45 = arith.divf %43, %44 : vector<8x896xf32>
    %c0_27 = arith.constant 0 : index
    %c0_28 = arith.constant 0 : index
    %46 = vector.load %arg12[%c0_27, %c0_28] : memref<8x896xf32, #tpu.memory_space<vmem>>, vector<8x896xf32>
    tpu.vector_store %arg12[%c0_27, %c0_28], %45 {strides = array<i32>} : memref<8x896xf32, #tpu.memory_space<vmem>>, vector<8x896xf32>,
    %47 = tpu.iota {dimensions = array<i32: 1>} : vector<8x128xi32>
    %c8_i32 = arith.constant 8 : i32
    %48 = vector.broadcast %c8_i32 : i32 to vector<8x128xi32>
    %49 = arith.cmpi eq, %47, %48 : vector<8x128xi32>
    %cst_29 = arith.constant 0.000000e+00 : f32
    %50 = vector.shape_cast %27 : vector<8x1xf32> to vector<8x1xf32>
    %51 = vector.broadcast %50 : vector<8x1xf32> to vector<8x128xf32>
    %52 = vector.broadcast %cst_29 : f32 to vector<8x128xf32>
    %53 = arith.select %49, %51, %52 : vector<8x128xi1>, vector<8x128xf32>
    %54 = arith.addf %12, %53 : vector<8x128xf32>
    %c0_30 = arith.constant 0 : index
    %c0_31 = arith.constant 0 : index
    %55 = vector.load %arg13[%c0_30, %c0_31] : memref<8x128xf32, #tpu.memory_space<vmem>>, vector<8x128xf32>
    tpu.vector_store %arg13[%c0_30, %c0_31], %54 {strides = array<i32>} : memref<8x128xf32, #tpu.memory_space<vmem>>, vector<8x128xf32>,
    return
  }
  func.func @transform_0(%arg0: i32) -> (i32, i32) {
    %c0_i32 = arith.constant 0 : i32
    %c0_i32_0 = arith.constant 0 : i32
    return %arg0, %c0_i32 : i32, i32
  }
  func.func @transform_1(%arg0: i32) -> (i32, i32) {
    %c0_i32 = arith.constant 0 : i32
    %c0_i32_0 = arith.constant 0 : i32
    %c0_i32_1 = arith.constant 0 : i32
    return %c0_i32, %c0_i32_0 : i32, i32
  }
  func.func @transform_2(%arg0: i32) -> (i32, i32) {
    %c0_i32 = arith.constant 0 : i32
    %c0_i32_0 = arith.constant 0 : i32
    %c0_i32_1 = arith.constant 0 : i32
    return %c0_i32, %c0_i32_0 : i32, i32
  }
  func.func @transform_3(%arg0: i32) -> (i32, i32) {
    %c0_i32 = arith.constant 0 : i32
    %c0_i32_0 = arith.constant 0 : i32
    %c0_i32_1 = arith.constant 0 : i32
    return %c0_i32, %c0_i32_0 : i32, i32
  }
  func.func @transform_4(%arg0: i32) -> (i32, i32) {
    %c0_i32 = arith.constant 0 : i32
    %c0_i32_0 = arith.constant 0 : i32
    %c0_i32_1 = arith.constant 0 : i32
    return %c0_i32, %c0_i32_0 : i32, i32
  }
  func.func @transform_5(%arg0: i32) -> (i32, i32) {
    %c0_i32 = arith.constant 0 : i32
    %c0_i32_0 = arith.constant 0 : i32
    %c0_i32_1 = arith.constant 0 : i32
    return %c0_i32, %c0_i32_0 : i32, i32
  }
  func.func @transform_6(%arg0: i32) -> (i32, i32) {
    %c0_i32 = arith.constant 0 : i32
    %c0_i32_0 = arith.constant 0 : i32
    %c0_i32_1 = arith.constant 0 : i32
    return %c0_i32, %c0_i32_0 : i32, i32
  }
  func.func @transform_7(%arg0: i32) -> (i32, i32) {
    %c0_i32 = arith.constant 0 : i32
    %c0_i32_0 = arith.constant 0 : i32
    %c0_i32_1 = arith.constant 0 : i32
    return %c0_i32, %c0_i32_0 : i32, i32
  }
  func.func @transform_8(%arg0: i32) -> (i32, i32) {
    %c0_i32 = arith.constant 0 : i32
    %c0_i32_0 = arith.constant 0 : i32
    %c0_i32_1 = arith.constant 0 : i32
    return %c0_i32, %c0_i32_0 : i32, i32
  }
  func.func @transform_9(%arg0: i32) -> i32 {
    %c0_i32 = arith.constant 0 : i32
    %c0_i32_0 = arith.constant 0 : i32
    return %c0_i32 : i32
  }
  func.func @transform_10(%arg0: i32) -> (i32, i32) {
    %c0_i32 = arith.constant 0 : i32
    %c0_i32_0 = arith.constant 0 : i32
    return %arg0, %c0_i32 : i32, i32
  }
  func.func @transform_11(%arg0: i32) -> (i32, i32) {
    %c0_i32 = arith.constant 0 : i32
    %c0_i32_0 = arith.constant 0 : i32
    return %arg0, %c0_i32 : i32, i32
  }
  func.func @transform_12(%arg0: i32) -> (i32, i32) {
    %c0_i32 = arith.constant 0 : i32
    %c0_i32_0 = arith.constant 0 : i32
    return %arg0, %c0_i32 : i32, i32
  }
}

</mosaic_0001>

<bundles_post_ra>
// kernel: rotvae_forward.1
= control target key start
LH: loop header
LB: loop body
LE: loop exit
PB: predicated region body
PF: predicated region fallthrough
CT: control target
= control target key end

     0   :  { %18 = vsyncpa [#allocation3], 0  ;;  %s5638_s0 = inlined_call_operand.vmem [shape: bf16[8,784], index: 0, kind: input, shape index: {}]   ;;  %s5639_s1 = inlined_call_operand.hbm [shape: bf16[784,512], index: 1, kind: input, shape index: {}]   ;;  %s5640_s2 = inlined_call_operand.vmem [shape: f32[1,512], index: 2, kind: input, shape index: {}]   ;;  %s5641_s3 = inlined_call_operand.hbm [shape: f32[512,128], index: 3, kind: input, shape index: {}]   ;;  %s5642_s4 = inlined_call_operand.vmem [shape: f32[1,128], index: 4, kind: input, shape index: {}]   ;;  %s5643_s5 = inlined_call_operand.vmem [shape: f32[4,512], index: 5, kind: input, shape index: {}]   ;;  %s5644_s6 = inlined_call_operand.vmem [shape: f32[1,512], index: 6, kind: input, shape index: {}]   ;;  %s5645_s7 = inlined_call_operand.hbm [shape: bf16[512,896], index: 7, kind: input, shape index: {}]   ;;  %s5646_s8 = inlined_call_operand.vmem [shape: f32[1,896], index: 8, kind: input, shape index: {}]   ;;  %s5647_s9 = inlined_call_operand.vmem [shape: f32[2], index: 9, kind: input, shape index: {}]   ;;  %s5648_s10 = inlined_call_operand.vmem [shape: f32[8,4], index: 10, kind: input, shape index: {}]   ;;  %s5649_s11 = inlined_call_operand.hbm [shape: f32[8,896], index: 11, kind: output, shape index: {0}]   ;;  %s5650_s12 = inlined_call_operand.vmem [shape: f32[8,128], index: 12, kind: output, shape index: {1}]  }
   0x1   :  { %19 = vsyncpa [#allocation7], 0 }
   0x2   :  { %20 = vsyncpa [#allocation5], 0 }
   0x3   :  { %21 = vsyncpa [#allocation4], 0  ;;  %s5372_s21 = smov [#allocation6]   ;;  %s5264_s25 = scalar_lea.hbm %s5641_s3, 8192 }
   0x4   :  { %s43_s22 = sshll.u32 %s5372_s21, 4  ;;  %p5265_p0 = scmp.ne.s32.totalorder %s5641_s3, %s5264_s25  ;;  %s44_s22 = int_to_ptr.vmem [resolvable:$true] %s43_s22 }
   0x5   :  { %p5268_p1 = scmp.lt.u32.totalorder %s5264_s25, %s5641_s3 }
   0x7   :  { %p5270_p2 = pnand %p5268_p1, %p5265_p0 }
   0x9   :  { %5273 = shalt.err (!%p5270_p2)
}
   0xa   :  { %s5274_s30 = scalar_lea.vmem %s44_s22, 8192  ;;  %p5279_p4 = scmp.lt.s32.totalorder %s44_s22, %s44_s22 }
   0xb   :  { %p5275_p3 = scmp.ne.s32.totalorder %s44_s22, %s5274_s30  ;;  %p5280_p5 = scmp.lt.s32.totalorder %s5274_s30, %s5274_s30 }
   0xd   :  { %p5281_p6 = por %p5280_p5, %p5279_p4 }
   0xf   :  { %p5282_p7 = pnand %p5281_p6, %p5275_p3 }
  0x11   :  { %5285 = shalt.err (!%p5282_p7)
}
  0x12   :  { %s5373_s13 = smov 128   ;;  %s5374_s14 = smov 8  }
  0x13   :  { %49 = dma.hbm_to_vmem [thread:$0]  %s5641_s3, 8192, %s44_s22, [#allocation7], %s5373_s13, %s5373_s13, %s5374_s14  }
  0x14   :  { %s5375_s17 = smov [#allocation2]   ;;  %s5286_s21 = scalar_lea.hbm %s5639_s1, 25088 }
  0x15   :  { %s29_s18 = sshll.u32 %s5375_s17, 4  ;;  %p5287_p8 = scmp.ne.s32.totalorder %s5639_s1, %s5286_s21  ;;  %s30_s18 = int_to_ptr.vmem [resolvable:$true] %s29_s18 }
  0x16   :  { %p5290_p9 = scmp.lt.u32.totalorder %s5286_s21, %s5639_s1 }
  0x18   :  { %p5292_p10 = pnand %p5290_p9, %p5287_p8 }
  0x1a   :  { %5295 = shalt.err (!%p5292_p10)
}
  0x1b   :  { %s5296_s27 = scalar_lea.vmem %s30_s18, 25088  ;;  %p5301_p12 = scmp.lt.s32.totalorder %s30_s18, %s30_s18 }
  0x1c   :  { %p5297_p11 = scmp.ne.s32.totalorder %s30_s18, %s5296_s27  ;;  %p5302_p13 = scmp.lt.s32.totalorder %s5296_s27, %s5296_s27 }
  0x1e   :  { %p5303_p0 = por %p5302_p13, %p5301_p12 }
  0x20   :  { %p5304_p1 = pnand %p5303_p0, %p5297_p11 }
  0x22   :  { %5307 = shalt.err (!%p5304_p1)
}
  0x23   :  { %s5376_s3 = smov 256   ;;  %s5377_s22 = smov 16  }
  0x24   :  { %35 = dma.hbm_to_vmem [thread:$0]  %s5639_s1, 25088, %s30_s18, [#allocation3], %s5376_s3, %s5376_s3, %s5377_s22  }
  0x25   :  { %s5378_s30 = smov [#allocation8]   ;;  %s76_s16 = sshll.u32 %s5647_s9, 4  ;;  %s77_s16 = int_to_ptr.vmem [resolvable:$true] %s76_s16 }
  0x26   :  { %s61_s13 = sshll.u32 %s5378_s30, 4  ;;  %s5308_s20 = scalar_lea.hbm %s5645_s7, 28672  ;;  %s62_s13 = int_to_ptr.vmem [resolvable:$true] %s61_s13 }
  0x27   :  { %p5309_p2 = scmp.ne.s32.totalorder %s5645_s7, %s5308_s20  ;;  %p5312_p3 = scmp.lt.u32.totalorder %s5308_s20, %s5645_s7 }
  0x29   :  { %p5314_p4 = pnand %p5312_p3, %p5309_p2 }
  0x2b   :  { %5317 = shalt.err (!%p5314_p4)
}
  0x2c   :  { %s5318_s1 = scalar_lea.vmem %s62_s13, 28672  ;;  %p5323_p6 = scmp.lt.s32.totalorder %s62_s13, %s62_s13 }
  0x2d   :  { %p5319_p5 = scmp.ne.s32.totalorder %s62_s13, %s5318_s1  ;;  %p5324_p7 = scmp.lt.s32.totalorder %s5318_s1, %s5318_s1 }
  0x2f   :  { %p5325_p8 = por %p5324_p7, %p5323_p6 }
  0x31   :  { %p5326_p9 = pnand %p5325_p8, %p5319_p5 }
  0x33   :  { %5329 = shalt.err (!%p5326_p9)
}
  0x34   :  { %s5379_s9 = smov 448   ;;  %s5380_s18 = smov 28  }
  0x35   :  { %67 = dma.hbm_to_vmem [thread:$0]  %s5645_s7, 28672, %s62_s13, [#allocation7], %s5379_s9, %s5379_s9, %s5380_s18  }
  0x36   :  { %s5330_s3 = scalar_lea.vmem %s77_s16, 16  ;;  %p5335_p11 = scmp.lt.s32.totalorder %s77_s16, %s77_s16 }
  0x37   :  { %p5331_p10 = scmp.ne.s32.totalorder %s77_s16, %s5330_s3  ;;  %p5336_p12 = scmp.lt.s32.totalorder %s5330_s3, %s5330_s3 }
  0x39   :  { %p5337_p13 = por %p5336_p12, %p5335_p11 }
  0x3b   :  { %p5338_p0 = pnand %p5337_p13, %p5331_p10 }
  0x3d   :  { %5341 = shalt.err (!%p5338_p0)
}
  0x3e   :  { %s5381_s22 = smov [#allocation9]  }
  0x3f   :  { %79 = dma.vmem_to_smem %s77_s16, 16, %s5381_s22, [#allocation5]  }
  0x40   :  { %5364 = dma.done.wait [#allocation3], 25088  }
  0x41   :  { %5365 = vsyncadd [#allocation3], 4294942208 }
  0x42   :  { %5366 = dma.done.wait [#allocation7], 36864  }
  0x43   :  { %5367 = vsyncadd [#allocation7], 4294930432 }
  0x44   :  { %5368 = dma.done.wait [#allocation5], 16  }
  0x45   :  { %5369 = vsyncadd [#allocation5], 4294967280 }
  0x46   :  { %94 = sfence }
  0x47   :  { %v4611_v0 = vld [vmem:[#allocation2 + $0x4] ss:$16 sps:$4 sm:$0xff]   ;;  %v4613_v1 = vld [vmem:[#allocation2 + $0xc] ss:$16 sps:$4 sm:$0xff]   ;;  %v4615_v2 = vld [vmem:[#allocation2] ss:$16 sps:$4 sm:$0xff]  }
  0x48   :  { %1326 = vmatprep.subr.bf16.mxu0 %v4611_v0  ;;  %v4616_v3 = vld [vmem:[#allocation2 + $0x8] ss:$16 sps:$4 sm:$0xff]   ;;  %1490 = vmatprep.subr.bf16.mxu1 %v4613_v1  ;;  %v4617_v4 = vld [vmem:[#allocation2 + $0x24] ss:$16 sps:$4 sm:$0xff]   ;;  %v4619_v5 = vld [vmem:[#allocation2 + $0x2c] ss:$16 sps:$4 sm:$0xff]  }
  0x49   :  { %1327 = vmatpush1.bf16.msra.mxu0 %v4615_v2  ;;  %1491 = vmatpush1.bf16.msra.mxu1 %v4616_v3  ;;  %v4621_v6 = vld [vmem:[#allocation2 + $0x20] ss:$16 sps:$4 sm:$0xff]   ;;  %v4622_v7 = vld [vmem:[#allocation2 + $0x28] ss:$16 sps:$4 sm:$0xff]   ;;  %v4623_v8 = vld [vmem:[#allocation2 + $0x44] ss:$16 sps:$4 sm:$0xff]  }
  0x4a   :  { %1328 = vmatprep.subr.bf16.mxu0 %v4617_v4  ;;  %1492 = vmatprep.subr.bf16.mxu1 %v4619_v5  ;;  %v4625_v9 = vld [vmem:[#allocation2 + $0x4c] ss:$16 sps:$4 sm:$0xff]   ;;  %v4627_v10 = vld [vmem:[#allocation2 + $0x40] ss:$16 sps:$4 sm:$0xff]   ;;  %v4628_v11 = vld [vmem:[#allocation2 + $0x48] ss:$16 sps:$4 sm:$0xff]  }
  0x4b   :  { %v4629_v12 = vld [vmem:[#allocation2 + $0x64] ss:$16 sps:$4 sm:$0xff]   ;;  %v4631_v13 = vld [vmem:[#allocation2 + $0x6c] ss:$16 sps:$4 sm:$0xff]   ;;  %v4633_v14 = vld [vmem:[#allocation2 + $0x60] ss:$16 sps:$4 sm:$0xff]  }
  0x4c   :  { %v4634_v15 = vld [vmem:[#allocation2 + $0x68] ss:$16 sps:$4 sm:$0xff]   ;;  %v4635_v16 = vld [vmem:[#allocation2 + $0x84] ss:$16 sps:$4 sm:$0xff]   ;;  %v4637_v17 = vld [vmem:[#allocation2 + $0x8c] ss:$16 sps:$4 sm:$0xff]  }
  0x4d   :  { %1329 = vmatpush1.bf16.msra.mxu0 %v4621_v6  ;;  %1493 = vmatpush1.bf16.msra.mxu1 %v4622_v7  ;;  %v4639_v18 = vld [vmem:[#allocation2 + $0x80] ss:$16 sps:$4 sm:$0xff]   ;;  %v4640_v19 = vld [vmem:[#allocation2 + $0x88] ss:$16 sps:$4 sm:$0xff]   ;;  %v4641_v20 = vld [vmem:[#allocation2 + $0xa4] ss:$16 sps:$4 sm:$0xff]  }
  0x4e   :  { %1330 = vmatprep.subr.bf16.mxu0 %v4623_v8  ;;  %1494 = vmatprep.subr.bf16.mxu1 %v4625_v9  ;;  %v4643_v21 = vld [vmem:[#allocation2 + $0xac] ss:$16 sps:$4 sm:$0xff]   ;;  %v4645_v22 = vld [vmem:[#allocation2 + $0xa0] ss:$16 sps:$4 sm:$0xff]   ;;  %v4646_v23 = vld [vmem:[#allocation2 + $0xa8] ss:$16 sps:$4 sm:$0xff]  }
  0x4f   :  { %v4647_v24 = vld [vmem:[#allocation2 + $0xc4] ss:$16 sps:$4 sm:$0xff]   ;;  %v4649_v25 = vld [vmem:[#allocation2 + $0xcc] ss:$16 sps:$4 sm:$0xff]   ;;  %v4651_v26 = vld [vmem:[#allocation2 + $0xc0] ss:$16 sps:$4 sm:$0xff]  }
  0x50   :  { %v4652_v27 = vld [vmem:[#allocation2 + $0xc8] ss:$16 sps:$4 sm:$0xff]   ;;  %v4653_v28 = vld [vmem:[#allocation2 + $0xe4] ss:$16 sps:$4 sm:$0xff]   ;;  %v4655_v29 = vld [vmem:[#allocation2 + $0xec] ss:$16 sps:$4 sm:$0xff]  }
  0x51   :  { %1331 = vmatpush1.bf16.msra.mxu0 %v4627_v10  ;;  %1495 = vmatpush1.bf16.msra.mxu1 %v4628_v11  ;;  %v4657_v30 = vld [vmem:[#allocation2 + $0xe0] ss:$16 sps:$4 sm:$0xff]   ;;  %v4658_v31 = vld [vmem:[#allocation2 + $0xe8] ss:$16 sps:$4 sm:$0xff]   ;;  %v4659_v32 = vld [vmem:[#allocation2 + $0x104] ss:$16 sps:$4 sm:$0xff]  }
  0x52   :  { %1332 = vmatprep.subr.bf16.mxu0 %v4629_v12  ;;  %1496 = vmatprep.subr.bf16.mxu1 %v4631_v13  ;;  %v4661_v33 = vld [vmem:[#allocation2 + $0x10c] ss:$16 sps:$4 sm:$0xff]   ;;  %v4663_v34 = vld [vmem:[#allocation2 + $0x100] ss:$16 sps:$4 sm:$0xff]   ;;  %v4664_v35 = vld [vmem:[#allocation2 + $0x108] ss:$16 sps:$4 sm:$0xff]  }
  0x53   :  { %v4665_v36 = vld [vmem:[#allocation2 + $0x124] ss:$16 sps:$4 sm:$0xff]   ;;  %v4667_v37 = vld [vmem:[#allocation2 + $0x12c] ss:$16 sps:$4 sm:$0xff]   ;;  %v4669_v38 = vld [vmem:[#allocation2 + $0x120] ss:$16 sps:$4 sm:$0xff]  }
  0x54   :  { %v4670_v39 = vld [vmem:[#allocation2 + $0x128] ss:$16 sps:$4 sm:$0xff]   ;;  %v4671_v40 = vld [vmem:[#allocation2 + $0x144] ss:$16 sps:$4 sm:$0xff]   ;;  %v4673_v41 = vld [vmem:[#allocation2 + $0x14c] ss:$16 sps:$4 sm:$0xff]  }
  0x55   :  { %1333 = vmatpush1.bf16.msra.mxu0 %v4633_v14  ;;  %1497 = vmatpush1.bf16.msra.mxu1 %v4634_v15  ;;  %v4675_v42 = vld [vmem:[#allocation2 + $0x140] ss:$16 sps:$4 sm:$0xff]   ;;  %v4676_v43 = vld [vmem:[#allocation2 + $0x148] ss:$16 sps:$4 sm:$0xff]   ;;  %v4677_v44 = vld [vmem:[#allocation2 + $0x164] ss:$16 sps:$4 sm:$0xff]  }
  0x56   :  { %1334 = vmatprep.subr.bf16.mxu0 %v4635_v16  ;;  %1498 = vmatprep.subr.bf16.mxu1 %v4637_v17  ;;  %v4679_v45 = vld [vmem:[#allocation2 + $0x16c] ss:$16 sps:$4 sm:$0xff]   ;;  %v96_v46 = vld [vmem:[%s5638_s0] sm:$0xff]  ;;  %v4682_v49 = vld [vmem:[#allocation2 + $0x168] ss:$16 sps:$4 sm:$0xff]   ;;  %v5382_v13 = vmov 0  }
  0x57   :  { %v4681_v47 = vld [vmem:[#allocation2 + $0x160] ss:$16 sps:$4 sm:$0xff]   ;;  %v3929_v48 = vcombine.high %v96_v46, %v96_v46  ;;  %v4683_v50 = vld [vmem:[#allocation2 + $0x184] ss:$16 sps:$4 sm:$0xff]   ;;  %v4685_v51 = vld [vmem:[#allocation2 + $0x18c] ss:$16 sps:$4 sm:$0xff]   ;;  %v3928_v4 = vcombine.low %v96_v46, %v96_v46  ;;  %4610 = vset.pattern.permute.xlu0 %v5382_v13 }
  0x58   :  { %v4687_v52 = vld [vmem:[#allocation2 + $0x180] ss:$16 sps:$4 sm:$0xff]   ;;  %v4688_v53 = vld [vmem:[#allocation2 + $0x188] ss:$16 sps:$4 sm:$0xff]   ;;  %v4689_v54 = vld [vmem:[#allocation2 + $0x1a4] ss:$16 sps:$4 sm:$0xff]  }
  0x59   :  { %1335 = vmatpush1.bf16.msra.mxu0 %v4639_v18  ;;  %1499 = vmatpush1.bf16.msra.mxu1 %v4640_v19  ;;  %v4691_v55 = vld [vmem:[#allocation2 + $0x1ac] ss:$16 sps:$4 sm:$0xff]   ;;  %v4693_v56 = vld [vmem:[#allocation2 + $0x1a0] ss:$16 sps:$4 sm:$0xff]   ;;  %v4694_v57 = vld [vmem:[#allocation2 + $0x1a8] ss:$16 sps:$4 sm:$0xff]  }
  0x5a   :  { %1336 = vmatprep.subr.bf16.mxu0 %v4641_v20  ;;  %1500 = vmatprep.subr.bf16.mxu1 %v4643_v21  ;;  %v4695_v58 = vld [vmem:[#allocation2 + $0x1c4] ss:$16 sps:$4 sm:$0xff]   ;;  %v4697_v59 = vld [vmem:[#allocation2 + $0x1cc] ss:$16 sps:$4 sm:$0xff]   ;;  %v4699_v60 = vld [vmem:[#allocation2 + $0x1c0] ss:$16 sps:$4 sm:$0xff]  }
  0x5b   :  { %1358 = vmatprep.mubr.bf16.mxu0 %v3929_v48  ;;  %1522 = vmatprep.mubr.bf16.mxu1 %v3929_v48  ;;  %v4700_v61 = vld [vmem:[#allocation2 + $0x1c8] ss:$16 sps:$4 sm:$0xff]   ;;  %v4701_v62 = vld [vmem:[#allocation2 + $0x1e4] ss:$16 sps:$4 sm:$0xff]   ;;  %v4703_v63 = vld [vmem:[#allocation2 + $0x1ec] ss:$16 sps:$4 sm:$0xff]  }
  0x5c   :  { %v4705_v0 = vld [vmem:[#allocation2 + $0x1e0] ss:$16 sps:$4 sm:$0xff]   ;;  %v4706_v1 = vld [vmem:[#allocation2 + $0x1e8] ss:$16 sps:$4 sm:$0xff]   ;;  %v4711_v2 = vld [vmem:[#allocation2 + $0x204] ss:$16 sps:$4 sm:$0xff]  }
  0x5d   :  { %1337 = vmatpush1.bf16.msra.mxu0 %v4645_v22  ;;  %1501 = vmatpush1.bf16.msra.mxu1 %v4646_v23  ;;  %v4714_v3 = vld [vmem:[#allocation2 + $0x20c] ss:$16 sps:$4 sm:$0xff]   ;;  %v4709_v5 = vld [vmem:[#allocation2 + $0x200] ss:$16 sps:$4 sm:$0xff]   ;;  %v4712_v6 = vld [vmem:[#allocation2 + $0x208] ss:$16 sps:$4 sm:$0xff]  }
  0x5e   :  { %1338 = vmatprep.subr.bf16.mxu0 %v4647_v24  ;;  %1502 = vmatprep.subr.bf16.mxu1 %v4649_v25  ;;  %v4717_v7 = vld [vmem:[#allocation2 + $0x224] ss:$16 sps:$4 sm:$0xff]   ;;  %v4720_v8 = vld [vmem:[#allocation2 + $0x22c] ss:$16 sps:$4 sm:$0xff]   ;;  %v4715_v9 = vld [vmem:[#allocation2 + $0x220] ss:$16 sps:$4 sm:$0xff]  }
  0x5f   :  { %v4718_v10 = vld [vmem:[#allocation2 + $0x228] ss:$16 sps:$4 sm:$0xff]   ;;  %v4723_v11 = vld [vmem:[#allocation2 + $0x244] ss:$16 sps:$4 sm:$0xff]   ;;  %v4726_v12 = vld [vmem:[#allocation2 + $0x24c] ss:$16 sps:$4 sm:$0xff]  }
  0x60   :  { %v4721_v14 = vld [vmem:[#allocation2 + $0x240] ss:$16 sps:$4 sm:$0xff]   ;;  %v4724_v15 = vld [vmem:[#allocation2 + $0x248] ss:$16 sps:$4 sm:$0xff]   ;;  %v4729_v16 = vld [vmem:[#allocation2 + $0x264] ss:$16 sps:$4 sm:$0xff]  }
  0x61   :  { %1339 = vmatpush1.bf16.msra.mxu0 %v4651_v26  ;;  %1503 = vmatpush1.bf16.msra.mxu1 %v4652_v27  ;;  %v4732_v17 = vld [vmem:[#allocation2 + $0x26c] ss:$16 sps:$4 sm:$0xff]   ;;  %v4727_v18 = vld [vmem:[#allocation2 + $0x260] ss:$16 sps:$4 sm:$0xff]   ;;  %v4730_v19 = vld [vmem:[#allocation2 + $0x268] ss:$16 sps:$4 sm:$0xff]  }
  0x62   :  { %1340 = vmatprep.subr.bf16.mxu0 %v4653_v28  ;;  %1504 = vmatprep.subr.bf16.mxu1 %v4655_v29  ;;  %v4735_v20 = vld [vmem:[#allocation2 + $0x284] ss:$16 sps:$4 sm:$0xff]   ;;  %v4738_v21 = vld [vmem:[#allocation2 + $0x28c] ss:$16 sps:$4 sm:$0xff]   ;;  %v4733_v22 = vld [vmem:[#allocation2 + $0x280] ss:$16 sps:$4 sm:$0xff]  }
  0x63   :  { %v4736_v23 = vld [vmem:[#allocation2 + $0x288] ss:$16 sps:$4 sm:$0xff]   ;;  %v4741_v24 = vld [vmem:[#allocation2 + $0x2a4] ss:$16 sps:$4 sm:$0xff]   ;;  %v4744_v25 = vld [vmem:[#allocation2 + $0x2ac] ss:$16 sps:$4 sm:$0xff]  }
  0x64   :  { %v4739_v26 = vld [vmem:[#allocation2 + $0x2a0] ss:$16 sps:$4 sm:$0xff]   ;;  %v4742_v27 = vld [vmem:[#allocation2 + $0x2a8] ss:$16 sps:$4 sm:$0xff]   ;;  %v4747_v28 = vld [vmem:[#allocation2 + $0x2c4] ss:$16 sps:$4 sm:$0xff]  }
  0x65   :  { %1341 = vmatpush1.bf16.msra.mxu0 %v4657_v30  ;;  %1505 = vmatpush1.bf16.msra.mxu1 %v4658_v31  ;;  %v4750_v29 = vld [vmem:[#allocation2 + $0x2cc] ss:$16 sps:$4 sm:$0xff]   ;;  %v4771_v46 = vld [vmem:[#allocation2 + $0x344] ss:$16 sps:$4 sm:$0xff]   ;;  %v4769_v48 = vld [vmem:[#allocation2 + $0x340] ss:$16 sps:$4 sm:$0xff]  }
  0x66   :  { %1342 = vmatprep.subr.bf16.mxu0 %v4659_v32  ;;  %1506 = vmatprep.subr.bf16.mxu1 %v4661_v33  ;;  %v5497_v30 = vld [vmem:[%s5638_s0 + $0x8] sm:$0xff]  ;;  %v4745_v32 = vld [vmem:[#allocation2 + $0x2c0] ss:$16 sps:$4 sm:$0xff]   ;;  %vm1322_vm0 = vcmask 130048   ;;  %vm1917_vm1 = vcmask 1043456   ;;  %s1879_s25 = sld [smem:[#allocation9]] }
  0x67   :  { %v3931_v31 = vcombine.high %v5497_v30, %v5497_v30  ;;  %v4748_v33 = vld [vmem:[#allocation2 + $0x2c8] ss:$16 sps:$4 sm:$0xff]   ;;  %s4134_s1 = sld [smem:[#allocation9 + $0x1]]  ;;  %vm1913_vm2 = vcmask 31744  }
  0x69   :  { %1343 = vmatpush1.bf16.msra.mxu0 %v4663_v34  ;;  %1507 = vmatpush1.bf16.msra.mxu1 %v4664_v35  ;;  %v4753_v34 = vld [vmem:[#allocation2 + $0x2e4] ss:$16 sps:$4 sm:$0xff]   ;;  %v4756_v35 = vld [vmem:[#allocation2 + $0x2ec] ss:$16 sps:$4 sm:$0xff]  }
  0x6a   :  { %1344 = vmatprep.subr.bf16.mxu0 %v4665_v36  ;;  %1508 = vmatprep.subr.bf16.mxu1 %v4667_v37  ;;  %v4751_v36 = vld [vmem:[#allocation2 + $0x2e0] ss:$16 sps:$4 sm:$0xff]   ;;  %v4754_v37 = vld [vmem:[#allocation2 + $0x2e8] ss:$16 sps:$4 sm:$0xff]  }
  0x6d   :  { %1345 = vmatpush1.bf16.msra.mxu0 %v4669_v38  ;;  %1509 = vmatpush1.bf16.msra.mxu1 %v4670_v39  ;;  %v4759_v38 = vld [vmem:[#allocation2 + $0x304] ss:$16 sps:$4 sm:$0xff]   ;;  %v4762_v39 = vld [vmem:[#allocation2 + $0x30c] ss:$16 sps:$4 sm:$0xff]  }
  0x6e   :  { %1346 = vmatprep.subr.bf16.mxu0 %v4671_v40  ;;  %1510 = vmatprep.subr.bf16.mxu1 %v4673_v41  ;;  %v4757_v40 = vld [vmem:[#allocation2 + $0x300] ss:$16 sps:$4 sm:$0xff]   ;;  %v4760_v41 = vld [vmem:[#allocation2 + $0x308] ss:$16 sps:$4 sm:$0xff]  }
  0x71   :  { %1347 = vmatpush1.bf16.msra.mxu0 %v4675_v42  ;;  %1511 = vmatpush1.bf16.msra.mxu1 %v4676_v43  ;;  %v4765_v42 = vld [vmem:[#allocation2 + $0x324] ss:$16 sps:$4 sm:$0xff]   ;;  %v4768_v43 = vld [vmem:[#allocation2 + $0x32c] ss:$16 sps:$4 sm:$0xff]  }
  0x72   :  { %1348 = vmatprep.subr.bf16.mxu0 %v4677_v44  ;;  %1512 = vmatprep.subr.bf16.mxu1 %v4679_v45  ;;  %v4763_v44 = vld [vmem:[#allocation2 + $0x320] ss:$16 sps:$4 sm:$0xff]   ;;  %v4766_v45 = vld [vmem:[#allocation2 + $0x328] ss:$16 sps:$4 sm:$0xff]  }
  0x75   :  { %1349 = vmatpush1.bf16.msra.mxu0 %v4681_v47  ;;  %1513 = vmatpush1.bf16.msra.mxu1 %v4682_v49  ;;  %v4774_v47 = vld [vmem:[#allocation2 + $0x34c] ss:$16 sps:$4 sm:$0xff]   ;;  %v4772_v49 = vld [vmem:[#allocation2 + $0x348] ss:$16 sps:$4 sm:$0xff]  }
  0x76   :  { %1350 = vmatprep.subr.bf16.mxu0 %v4683_v50  ;;  %1514 = vmatprep.subr.bf16.mxu1 %v4685_v51  ;;  %v4777_v50 = vld [vmem:[#allocation2 + $0x364] ss:$16 sps:$4 sm:$0xff]   ;;  %v4780_v51 = vld [vmem:[#allocation2 + $0x36c] ss:$16 sps:$4 sm:$0xff]  }
  0x79   :  { %1351 = vmatpush1.bf16.msra.mxu0 %v4687_v52  ;;  %1515 = vmatpush1.bf16.msra.mxu1 %v4688_v53  ;;  %v4775_v52 = vld [vmem:[#allocation2 + $0x360] ss:$16 sps:$4 sm:$0xff]   ;;  %v4778_v53 = vld [vmem:[#allocation2 + $0x368] ss:$16 sps:$4 sm:$0xff]  }
  0x7a   :  { %1352 = vmatprep.subr.bf16.mxu0 %v4689_v54  ;;  %1516 = vmatprep.subr.bf16.mxu1 %v4691_v55  ;;  %v4783_v54 = vld [vmem:[#allocation2 + $0x384] ss:$16 sps:$4 sm:$0xff]   ;;  %v4786_v55 = vld [vmem:[#allocation2 + $0x38c] ss:$16 sps:$4 sm:$0xff]  }
  0x7d   :  { %1353 = vmatpush1.bf16.msra.mxu0 %v4693_v56  ;;  %1517 = vmatpush1.bf16.msra.mxu1 %v4694_v57  ;;  %v4781_v56 = vld [vmem:[#allocation2 + $0x380] ss:$16 sps:$4 sm:$0xff]   ;;  %v4784_v57 = vld [vmem:[#allocation2 + $0x388] ss:$16 sps:$4 sm:$0xff]  }
  0x7e   :  { %1354 = vmatprep.subr.bf16.mxu0 %v4695_v58  ;;  %1518 = vmatprep.subr.bf16.mxu1 %v4697_v59  ;;  %v4789_v58 = vld [vmem:[#allocation2 + $0x3a4] ss:$16 sps:$4 sm:$0xff]   ;;  %v4792_v59 = vld [vmem:[#allocation2 + $0x3ac] ss:$16 sps:$4 sm:$0xff]  }
  0x81   :  { %1355 = vmatpush1.bf16.msra.mxu0 %v4699_v60  ;;  %1519 = vmatpush1.bf16.msra.mxu1 %v4700_v61  ;;  %v4787_v60 = vld [vmem:[#allocation2 + $0x3a0] ss:$16 sps:$4 sm:$0xff]   ;;  %v4790_v61 = vld [vmem:[#allocation2 + $0x3a8] ss:$16 sps:$4 sm:$0xff]  }
  0x82   :  { %1356 = vmatprep.subr.bf16.mxu0 %v4701_v62  ;;  %1520 = vmatprep.subr.bf16.mxu1 %v4703_v63  ;;  %v4795_v62 = vld [vmem:[#allocation2 + $0x3c4] ss:$16 sps:$4 sm:$0xff]   ;;  %v4798_v63 = vld [vmem:[#allocation2 + $0x3cc] ss:$16 sps:$4 sm:$0xff]  }
  0x85   :  { %1357 = vmatpush1.bf16.msra.mxu0 %v4705_v0  ;;  %1521 = vmatpush1.bf16.msra.mxu1 %v4706_v1  ;;  %v4793_v0 = vld [vmem:[#allocation2 + $0x3c0] ss:$16 sps:$4 sm:$0xff]   ;;  %v4796_v1 = vld [vmem:[#allocation2 + $0x3c8] ss:$16 sps:$4 sm:$0xff]  }
  0x86   :  { %1367 = vmatprep.subr.bf16.mxu0 %v4711_v2  ;;  %1531 = vmatprep.subr.bf16.mxu1 %v4714_v3  ;;  %v4801_v2 = vld [vmem:[#allocation2 + $0x3e4] ss:$16 sps:$4 sm:$0xff]   ;;  %v4804_v3 = vld [vmem:[#allocation2 + $0x3ec] ss:$16 sps:$4 sm:$0xff]  }
  0x88   :  { %1359 = vmatmul.mubr.bf16.vlgmr.msra.gmra.mrb[0].mxu0 %v3928_v4  ;;  %1523 = vmatmul.mubr.bf16.vlgmr.msra.gmra.mrb[0].mxu1 %v3928_v4  ;;  %v4799_v4 = vld [vmem:[#allocation2 + $0x3e0] ss:$16 sps:$4 sm:$0xff]  }
  0x89   :  { %1368 = vmatpush1.bf16.msra.mxu0 %v4709_v5  ;;  %1532 = vmatpush1.bf16.msra.mxu1 %v4712_v6  ;;  %v4802_v5 = vld [vmem:[#allocation2 + $0x3e8] ss:$16 sps:$4 sm:$0xff]   ;;  %v4809_v6 = vld [vmem:[#allocation2 + $0x404] ss:$16 sps:$4 sm:$0xff]  }
  0x8a   :  { %1369 = vmatprep.subr.bf16.mxu0 %v4717_v7  ;;  %1533 = vmatprep.subr.bf16.mxu1 %v4720_v8  ;;  %v4812_v7 = vld [vmem:[#allocation2 + $0x40c] ss:$16 sps:$4 sm:$0xff]   ;;  %v3930_v8 = vcombine.low %v5497_v30, %v5497_v30  ;;  %v4839_v30 = vld [vmem:[#allocation2 + $0x4a4] ss:$16 sps:$4 sm:$0xff]  }
  0x8b   :  { %1399 = vmatprep.mubr.bf16.mxu0 %v3931_v31  ;;  %1563 = vmatprep.mubr.bf16.mxu1 %v3931_v31  ;;  %v4842_v31 = vld [vmem:[#allocation2 + $0x4ac] ss:$16 sps:$4 sm:$0xff]  }
  0x8d   :  { %1370 = vmatpush1.bf16.msra.mxu0 %v4715_v9  ;;  %1534 = vmatpush1.bf16.msra.mxu1 %v4718_v10  ;;  %v4807_v9 = vld [vmem:[#allocation2 + $0x400] ss:$16 sps:$4 sm:$0xff]   ;;  %v4810_v10 = vld [vmem:[#allocation2 + $0x408] ss:$16 sps:$4 sm:$0xff]  }
  0x8e   :  { %1371 = vmatprep.subr.bf16.mxu0 %v4723_v11  ;;  %1535 = vmatprep.subr.bf16.mxu1 %v4726_v12  ;;  %v4815_v11 = vld [vmem:[#allocation2 + $0x424] ss:$16 sps:$4 sm:$0xff]  }
  0x8f   :  { %v5506_v12 = vld [vmem:[%s5638_s0 + $0x10] sm:$0xff] }
  0x91   :  { %1372 = vmatpush1.bf16.msra.mxu0 %v4721_v14  ;;  %1536 = vmatpush1.bf16.msra.mxu1 %v4724_v15  ;;  %v4818_v14 = vld [vmem:[#allocation2 + $0x42c] ss:$16 sps:$4 sm:$0xff]   ;;  %v3933_v15 = vcombine.high %v5506_v12, %v5506_v12 }
  0x92   :  { %1373 = vmatprep.subr.bf16.mxu0 %v4729_v16  ;;  %1537 = vmatprep.subr.bf16.mxu1 %v4732_v17  ;;  %v4813_v16 = vld [vmem:[#allocation2 + $0x420] ss:$16 sps:$4 sm:$0xff]   ;;  %v4816_v17 = vld [vmem:[#allocation2 + $0x428] ss:$16 sps:$4 sm:$0xff]  }
  0x95   :  { %1374 = vmatpush1.bf16.msra.mxu0 %v4727_v18  ;;  %1538 = vmatpush1.bf16.msra.mxu1 %v4730_v19  ;;  %v4821_v18 = vld [vmem:[#allocation2 + $0x444] ss:$16 sps:$4 sm:$0xff]   ;;  %v4824_v19 = vld [vmem:[#allocation2 + $0x44c] ss:$16 sps:$4 sm:$0xff]  }
  0x96   :  { %1375 = vmatprep.subr.bf16.mxu0 %v4735_v20  ;;  %1539 = vmatprep.subr.bf16.mxu1 %v4738_v21  ;;  %v4819_v20 = vld [vmem:[#allocation2 + $0x440] ss:$16 sps:$4 sm:$0xff]   ;;  %v4822_v21 = vld [vmem:[#allocation2 + $0x448] ss:$16 sps:$4 sm:$0xff]  }
  0x99   :  { %1376 = vmatpush1.bf16.msra.mxu0 %v4733_v22  ;;  %1540 = vmatpush1.bf16.msra.mxu1 %v4736_v23  ;;  %v4827_v22 = vld [vmem:[#allocation2 + $0x464] ss:$16 sps:$4 sm:$0xff]   ;;  %v4830_v23 = vld [vmem:[#allocation2 + $0x46c] ss:$16 sps:$4 sm:$0xff]  }
  0x9a   :  { %1377 = vmatprep.subr.bf16.mxu0 %v4741_v24  ;;  %1541 = vmatprep.subr.bf16.mxu1 %v4744_v25  ;;  %v4825_v24 = vld [vmem:[#allocation2 + $0x460] ss:$16 sps:$4 sm:$0xff]   ;;  %v4828_v25 = vld [vmem:[#allocation2 + $0x468] ss:$16 sps:$4 sm:$0xff]  }
  0x9d   :  { %1378 = vmatpush1.bf16.msra.mxu0 %v4739_v26  ;;  %1542 = vmatpush1.bf16.msra.mxu1 %v4742_v27  ;;  %v4833_v26 = vld [vmem:[#allocation2 + $0x484] ss:$16 sps:$4 sm:$0xff]   ;;  %v4836_v27 = vld [vmem:[#allocation2 + $0x48c] ss:$16 sps:$4 sm:$0xff]  }
  0x9e   :  { %1379 = vmatprep.subr.bf16.mxu0 %v4747_v28  ;;  %1543 = vmatprep.subr.bf16.mxu1 %v4750_v29  ;;  %v4831_v28 = vld [vmem:[#allocation2 + $0x480] ss:$16 sps:$4 sm:$0xff]   ;;  %v4834_v29 = vld [vmem:[#allocation2 + $0x488] ss:$16 sps:$4 sm:$0xff]  }
  0xa1   :  { %1380 = vmatpush1.bf16.msra.mxu0 %v4745_v32  ;;  %1544 = vmatpush1.bf16.msra.mxu1 %v4748_v33  ;;  %v4837_v32 = vld [vmem:[#allocation2 + $0x4a0] ss:$16 sps:$4 sm:$0xff]   ;;  %v4840_v33 = vld [vmem:[#allocation2 + $0x4a8] ss:$16 sps:$4 sm:$0xff]  }
  0xa2   :  { %1381 = vmatprep.subr.bf16.mxu0 %v4753_v34  ;;  %1545 = vmatprep.subr.bf16.mxu1 %v4756_v35  ;;  %v4845_v34 = vld [vmem:[#allocation2 + $0x4c4] ss:$16 sps:$4 sm:$0xff]   ;;  %v4848_v35 = vld [vmem:[#allocation2 + $0x4cc] ss:$16 sps:$4 sm:$0xff]  }
  0xa5   :  { %1382 = vmatpush1.bf16.msra.mxu0 %v4751_v36  ;;  %1546 = vmatpush1.bf16.msra.mxu1 %v4754_v37  ;;  %v4843_v36 = vld [vmem:[#allocation2 + $0x4c0] ss:$16 sps:$4 sm:$0xff]   ;;  %v4846_v37 = vld [vmem:[#allocation2 + $0x4c8] ss:$16 sps:$4 sm:$0xff]  }
  0xa6   :  { %1383 = vmatprep.subr.bf16.mxu0 %v4759_v38  ;;  %1547 = vmatprep.subr.bf16.mxu1 %v4762_v39  ;;  %v4851_v38 = vld [vmem:[#allocation2 + $0x4e4] ss:$16 sps:$4 sm:$0xff]   ;;  %v4854_v39 = vld [vmem:[#allocation2 + $0x4ec] ss:$16 sps:$4 sm:$0xff]  }
  0xa9   :  { %1384 = vmatpush1.bf16.msra.mxu0 %v4757_v40  ;;  %1548 = vmatpush1.bf16.msra.mxu1 %v4760_v41  ;;  %v4849_v40 = vld [vmem:[#allocation2 + $0x4e0] ss:$16 sps:$4 sm:$0xff]   ;;  %v4852_v41 = vld [vmem:[#allocation2 + $0x4e8] ss:$16 sps:$4 sm:$0xff]  }
  0xaa   :  { %1385 = vmatprep.subr.bf16.mxu0 %v4765_v42  ;;  %1549 = vmatprep.subr.bf16.mxu1 %v4768_v43  ;;  %v4857_v42 = vld [vmem:[#allocation2 + $0x504] ss:$16 sps:$4 sm:$0xff]   ;;  %v4860_v43 = vld [vmem:[#allocation2 + $0x50c] ss:$16 sps:$4 sm:$0xff]  }
  0xad   :  { %1386 = vmatpush1.bf16.msra.mxu0 %v4763_v44  ;;  %1550 = vmatpush1.bf16.msra.mxu1 %v4766_v45  ;;  %v4855_v44 = vld [vmem:[#allocation2 + $0x500] ss:$16 sps:$4 sm:$0xff]   ;;  %v4858_v45 = vld [vmem:[#allocation2 + $0x508] ss:$16 sps:$4 sm:$0xff]  }
  0xae   :  { %1387 = vmatprep.subr.bf16.mxu0 %v4771_v46  ;;  %1551 = vmatprep.subr.bf16.mxu1 %v4774_v47  ;;  %v4863_v46 = vld [vmem:[#allocation2 + $0x524] ss:$16 sps:$4 sm:$0xff]   ;;  %v4866_v47 = vld [vmem:[#allocation2 + $0x52c] ss:$16 sps:$4 sm:$0xff]  }
  0xb1   :  { %1388 = vmatpush1.bf16.msra.mxu0 %v4769_v48  ;;  %1552 = vmatpush1.bf16.msra.mxu1 %v4772_v49  ;;  %v4861_v48 = vld [vmem:[#allocation2 + $0x520] ss:$16 sps:$4 sm:$0xff]   ;;  %v4864_v49 = vld [vmem:[#allocation2 + $0x528] ss:$16 sps:$4 sm:$0xff]  }
  0xb2   :  { %1389 = vmatprep.subr.bf16.mxu0 %v4777_v50  ;;  %1553 = vmatprep.subr.bf16.mxu1 %v4780_v51  ;;  %v4869_v50 = vld [vmem:[#allocation2 + $0x544] ss:$16 sps:$4 sm:$0xff]   ;;  %v4872_v51 = vld [vmem:[#allocation2 + $0x54c] ss:$16 sps:$4 sm:$0xff]  }
  0xb5   :  { %1390 = vmatpush1.bf16.msra.mxu0 %v4775_v52  ;;  %1554 = vmatpush1.bf16.msra.mxu1 %v4778_v53  ;;  %v4867_v52 = vld [vmem:[#allocation2 + $0x540] ss:$16 sps:$4 sm:$0xff]   ;;  %v4870_v53 = vld [vmem:[#allocation2 + $0x548] ss:$16 sps:$4 sm:$0xff]  }
  0xb6   :  { %1391 = vmatprep.subr.bf16.mxu0 %v4783_v54  ;;  %1555 = vmatprep.subr.bf16.mxu1 %v4786_v55  ;;  %v4875_v54 = vld [vmem:[#allocation2 + $0x564] ss:$16 sps:$4 sm:$0xff]   ;;  %v4878_v55 = vld [vmem:[#allocation2 + $0x56c] ss:$16 sps:$4 sm:$0xff]  }
  0xb9   :  { %1392 = vmatpush1.bf16.msra.mxu0 %v4781_v56  ;;  %1556 = vmatpush1.bf16.msra.mxu1 %v4784_v57  ;;  %v4873_v56 = vld [vmem:[#allocation2 + $0x560] ss:$16 sps:$4 sm:$0xff]   ;;  %v4876_v57 = vld [vmem:[#allocation2 + $0x568] ss:$16 sps:$4 sm:$0xff]  }
  0xba   :  { %1393 = vmatprep.subr.bf16.mxu0 %v4789_v58  ;;  %1557 = vmatprep.subr.bf16.mxu1 %v4792_v59  ;;  %v4881_v58 = vld [vmem:[#allocation2 + $0x584] ss:$16 sps:$4 sm:$0xff]   ;;  %v4884_v59 = vld [vmem:[#allocation2 + $0x58c] ss:$16 sps:$4 sm:$0xff]  }
  0xbd   :  { %1394 = vmatpush1.bf16.msra.mxu0 %v4787_v60  ;;  %1558 = vmatpush1.bf16.msra.mxu1 %v4790_v61  ;;  %v4879_v60 = vld [vmem:[#allocation2 + $0x580] ss:$16 sps:$4 sm:$0xff]   ;;  %v4882_v61 = vld [vmem:[#allocation2 + $0x588] ss:$16 sps:$4 sm:$0xff]  }
  0xbe   :  { %1395 = vmatprep.subr.bf16.mxu0 %v4795_v62  ;;  %1559 = vmatprep.subr.bf16.mxu1 %v4798_v63  ;;  %v4887_v62 = vld [vmem:[#allocation2 + $0x5a4] ss:$16 sps:$4 sm:$0xff]   ;;  %v4890_v63 = vld [vmem:[#allocation2 + $0x5ac] ss:$16 sps:$4 sm:$0xff]  }
  0xc1   :  { %1396 = vmatpush1.bf16.msra.mxu0 %v4793_v0  ;;  %1560 = vmatpush1.bf16.msra.mxu1 %v4796_v1  ;;  %v4885_v0 = vld [vmem:[#allocation2 + $0x5a0] ss:$16 sps:$4 sm:$0xff]   ;;  %v4888_v1 = vld [vmem:[#allocation2 + $0x5a8] ss:$16 sps:$4 sm:$0xff]  }
  0xc2   :  { %1397 = vmatprep.subr.bf16.mxu0 %v4801_v2  ;;  %1561 = vmatprep.subr.bf16.mxu1 %v4804_v3  ;;  %v4893_v2 = vld [vmem:[#allocation2 + $0x5c4] ss:$16 sps:$4 sm:$0xff]   ;;  %v4896_v3 = vld [vmem:[#allocation2 + $0x5cc] ss:$16 sps:$4 sm:$0xff]  }
  0xc5   :  { %1398 = vmatpush1.bf16.msra.mxu0 %v4799_v4  ;;  %1562 = vmatpush1.bf16.msra.mxu1 %v4802_v5  ;;  %v4891_v4 = vld [vmem:[#allocation2 + $0x5c0] ss:$16 sps:$4 sm:$0xff]   ;;  %v4894_v5 = vld [vmem:[#allocation2 + $0x5c8] ss:$16 sps:$4 sm:$0xff]  }
  0xc6   :  { %1408 = vmatprep.subr.bf16.mxu0 %v4809_v6  ;;  %1572 = vmatprep.subr.bf16.mxu1 %v4812_v7  ;;  %v4899_v6 = vld [vmem:[#allocation2 + $0x5e4] ss:$16 sps:$4 sm:$0xff]   ;;  %v4902_v7 = vld [vmem:[#allocation2 + $0x5ec] ss:$16 sps:$4 sm:$0xff]  }
  0xc8   :  { %1400 = vmatmul.mubr.bf16.vlgmr.msra.gmra.mrb[0].mxu0 %v3930_v8  ;;  %1564 = vmatmul.mubr.bf16.vlgmr.msra.gmra.mrb[0].mxu1 %v3930_v8  ;;  %v4897_v8 = vld [vmem:[#allocation2 + $0x5e0] ss:$16 sps:$4 sm:$0xff]  }
  0xc9   :  { %1409 = vmatpush1.bf16.msra.mxu0 %v4807_v9  ;;  %1573 = vmatpush1.bf16.msra.mxu1 %v4810_v10  ;;  %v4900_v9 = vld [vmem:[#allocation2 + $0x5e8] ss:$16 sps:$4 sm:$0xff]   ;;  %v4907_v10 = vld [vmem:[#allocation2 + $0x604] ss:$16 sps:$4 sm:$0xff]  }
  0xca   :  { %1410 = vmatprep.subr.bf16.mxu0 %v4815_v11  ;;  %1574 = vmatprep.subr.bf16.mxu1 %v4818_v14  ;;  %v4910_v11 = vld [vmem:[#allocation2 + $0x60c] ss:$16 sps:$4 sm:$0xff]   ;;  %v1674_v14 = vld [vmem:[#allocation6 + $0x80] sm:$0xff] }
  0xcb   :  { %1440 = vmatprep.mubr.bf16.mxu0 %v3933_v15  ;;  %1604 = vmatprep.mubr.bf16.mxu1 %v3933_v15  ;;  %v1675_v15 = vld [vmem:[#allocation6 + $0x88] sm:$0xff] }
  0xcd   :  { %1411 = vmatpush1.bf16.msra.mxu0 %v4813_v16  ;;  %1575 = vmatpush1.bf16.msra.mxu1 %v4816_v17  ;;  %v4905_v16 = vld [vmem:[#allocation2 + $0x600] ss:$16 sps:$4 sm:$0xff]   ;;  %v4908_v17 = vld [vmem:[#allocation2 + $0x608] ss:$16 sps:$4 sm:$0xff]  }
  0xce   :  { %1412 = vmatprep.subr.bf16.mxu0 %v4821_v18  ;;  %1576 = vmatprep.subr.bf16.mxu1 %v4824_v19  ;;  %v3932_v18 = vcombine.low %v5506_v12, %v5506_v12  ;;  %v4486_v19 = vpack.c.bf16 %v1675_v15, %v1674_v14  ;;  %v4911_v12 = vld [vmem:[%s5638_s0 + $0x18] ss:$0 sps:$4 sm:$0xff]  }
  0xd1   :  { %1413 = vmatpush1.bf16.msra.mxu0 %v4819_v20  ;;  %1577 = vmatpush1.bf16.msra.mxu1 %v4822_v21  ;;  %v1658_v20 = vld [vmem:[#allocation6] sm:$0xff]  ;;  %v1659_v21 = vld [vmem:[#allocation6 + $0x8] sm:$0xff] }
  0xd2   :  { %1414 = vmatprep.subr.bf16.mxu0 %v4827_v22  ;;  %1578 = vmatprep.subr.bf16.mxu1 %v4830_v23  ;;  %v1676_v22 = vld [vmem:[#allocation6 + $0x90] sm:$0xff]  ;;  %v1677_v23 = vld [vmem:[#allocation6 + $0x98] sm:$0xff] }
  0xd5   :  { %1415 = vmatpush1.bf16.msra.mxu0 %v4825_v24  ;;  %1579 = vmatpush1.bf16.msra.mxu1 %v4828_v25  ;;  %v1660_v24 = vld [vmem:[#allocation6 + $0x10] sm:$0xff]  ;;  %v1661_v25 = vld [vmem:[#allocation6 + $0x18] sm:$0xff] }
  0xd6   :  { %1416 = vmatprep.subr.bf16.mxu0 %v4833_v26  ;;  %1580 = vmatprep.subr.bf16.mxu1 %v4836_v27  ;;  %v4488_v26 = vpack.c.bf16 %v1659_v21, %v1658_v20  ;;  %v1678_v27 = vld [vmem:[#allocation6 + $0xa0] sm:$0xff]  ;;  %v1691_v20 = vld [vmem:[#allocation6 + $0x108] sm:$0xff] }
  0xd9   :  { %1417 = vmatpush1.bf16.msra.mxu0 %v4831_v28  ;;  %1581 = vmatpush1.bf16.msra.mxu1 %v4834_v29  ;;  %v1679_v28 = vld [vmem:[#allocation6 + $0xa8] sm:$0xff]  ;;  %v4490_v29 = vpack.c.bf16 %v1677_v23, %v1676_v22 }
  0xda   :  { %1418 = vmatprep.subr.bf16.mxu0 %v4839_v30  ;;  %1582 = vmatprep.subr.bf16.mxu1 %v4842_v31  ;;  %v1662_v30 = vld [vmem:[#allocation6 + $0x20] sm:$0xff]  ;;  %v4492_v31 = vpack.c.bf16 %v1661_v25, %v1660_v24  ;;  %v1708_v24 = vld [vmem:[#allocation6 + $0x190] sm:$0xff]  ;;  %v1709_v25 = vld [vmem:[#allocation6 + $0x198] sm:$0xff] }
  0xdd   :  { %1419 = vmatpush1.bf16.msra.mxu0 %v4837_v32  ;;  %1583 = vmatpush1.bf16.msra.mxu1 %v4840_v33  ;;  %v1680_v32 = vld [vmem:[#allocation6 + $0xb0] sm:$0xff]  ;;  %v1681_v33 = vld [vmem:[#allocation6 + $0xb8] sm:$0xff] }
  0xde   :  { %1420 = vmatprep.subr.bf16.mxu0 %v4845_v34  ;;  %1584 = vmatprep.subr.bf16.mxu1 %v4848_v35  ;;  %v4494_v34 = vpack.c.bf16 %v1679_v28, %v1678_v27  ;;  %v1664_v35 = vld [vmem:[#allocation6 + $0x30] sm:$0xff] }
  0xe1   :  { %1421 = vmatpush1.bf16.msra.mxu0 %v4843_v36  ;;  %1585 = vmatpush1.bf16.msra.mxu1 %v4846_v37  ;;  %v1665_v36 = vld [vmem:[#allocation6 + $0x38] sm:$0xff] }
  0xe2   :  { %1422 = vmatprep.subr.bf16.mxu0 %v4851_v38  ;;  %1586 = vmatprep.subr.bf16.mxu1 %v4854_v39  ;;  %v1682_v38 = vld [vmem:[#allocation6 + $0xc0] sm:$0xff]  ;;  %v1683_v39 = vld [vmem:[#allocation6 + $0xc8] sm:$0xff] }
  0xe5   :  { %1423 = vmatpush1.bf16.msra.mxu0 %v4849_v40  ;;  %1587 = vmatpush1.bf16.msra.mxu1 %v4852_v41  ;;  %v4498_v40 = vpack.c.bf16 %v1681_v33, %v1680_v32  ;;  %v1666_v41 = vld [vmem:[#allocation6 + $0x40] sm:$0xff]  ;;  %v1693_v32 = vld [vmem:[#allocation6 + $0x118] sm:$0xff] }
  0xe6   :  { %1424 = vmatprep.subr.bf16.mxu0 %v4857_v42  ;;  %1588 = vmatprep.subr.bf16.mxu1 %v4860_v43  ;;  %v1667_v42 = vld [vmem:[#allocation6 + $0x48] sm:$0xff]  ;;  %v4500_v43 = vpack.c.bf16 %v1665_v36, %v1664_v35 }
  0xe7   :  { %v1711_v35 = vld [vmem:[#allocation6 + $0x1a8] sm:$0xff] }
  0xe9   :  { %1425 = vmatpush1.bf16.msra.mxu0 %v4855_v44  ;;  %1589 = vmatpush1.bf16.msra.mxu1 %v4858_v45  ;;  %v1684_v44 = vld [vmem:[#allocation6 + $0xd0] sm:$0xff]  ;;  %v1685_v45 = vld [vmem:[#allocation6 + $0xd8] sm:$0xff] }
  0xea   :  { %1426 = vmatprep.subr.bf16.mxu0 %v4863_v46  ;;  %1590 = vmatprep.subr.bf16.mxu1 %v4866_v47  ;;  %v4502_v46 = vpack.c.bf16 %v1683_v39, %v1682_v38  ;;  %v1668_v47 = vld [vmem:[#allocation6 + $0x50] sm:$0xff]  ;;  %v1694_v38 = vld [vmem:[#allocation6 + $0x120] sm:$0xff]  ;;  %v1695_v39 = vld [vmem:[#allocation6 + $0x128] sm:$0xff] }
  0xed   :  { %1427 = vmatpush1.bf16.msra.mxu0 %v4861_v48  ;;  %1591 = vmatpush1.bf16.msra.mxu1 %v4864_v49  ;;  %v1669_v48 = vld [vmem:[#allocation6 + $0x58] sm:$0xff]  ;;  %v4504_v49 = vpack.c.bf16 %v1667_v42, %v1666_v41  ;;  %v4528_v42 = vpack.c.bf16 %v1695_v39, %v1694_v38  ;;  %v1883_v38 = vstv %s4134_s1 }
  0xee   :  { %1428 = vmatprep.subr.bf16.mxu0 %v4869_v50  ;;  %1592 = vmatprep.subr.bf16.mxu1 %v4872_v51  ;;  %v1686_v50 = vld [vmem:[#allocation6 + $0xe0] sm:$0xff]  ;;  %v1687_v51 = vld [vmem:[#allocation6 + $0xe8] sm:$0xff]  ;;  %v1713_v41 = vld [vmem:[#allocation6 + $0x1b8] sm:$0xff] }
  0xf1   :  { %1429 = vmatpush1.bf16.msra.mxu0 %v4867_v52  ;;  %1593 = vmatpush1.bf16.msra.mxu1 %v4870_v53  ;;  %v4506_v52 = vpack.c.bf16 %v1685_v45, %v1684_v44  ;;  %v1670_v53 = vld [vmem:[#allocation6 + $0x60] sm:$0xff]  ;;  %v1696_v44 = vld [vmem:[#allocation6 + $0x130] sm:$0xff]  ;;  %v1697_v45 = vld [vmem:[#allocation6 + $0x138] sm:$0xff] }
  0xf2   :  { %1430 = vmatprep.subr.bf16.mxu0 %v4875_v54  ;;  %1594 = vmatprep.subr.bf16.mxu1 %v4878_v55  ;;  %v1671_v54 = vld [vmem:[#allocation6 + $0x68] sm:$0xff]  ;;  %v4508_v55 = vpack.c.bf16 %v1669_v48, %v1668_v47  ;;  %v4532_v48 = vpack.c.bf16 %v1697_v45, %v1696_v44  ;;  %v4922_v45 = vld [vmem:[#allocation8 + $0x3c] ss:$28 sps:$4 sm:$0xff]  }
  0xf3   :  { %v1715_v47 = vld [vmem:[#allocation6 + $0x1c8] sm:$0xff] }
  0xf4   :  { %v4919_v44 = vld [vmem:[#allocation8 + $0xc] ss:$28 sps:$4 sm:$0xff]  }
  0xf5   :  { %1431 = vmatpush1.bf16.msra.mxu0 %v4873_v56  ;;  %1595 = vmatpush1.bf16.msra.mxu1 %v4876_v57  ;;  %v4510_v56 = vpack.c.bf16 %v1687_v51, %v1686_v50  ;;  %v4512_v57 = vpack.c.bf16 %v1671_v54, %v1670_v53  ;;  %v1698_v50 = vld [vmem:[#allocation6 + $0x140] sm:$0xff]  ;;  %v1699_v51 = vld [vmem:[#allocation6 + $0x148] sm:$0xff]  ;;  %v1717_v53 = vld [vmem:[#allocation6 + $0x1d8] sm:$0xff] }
  0xf6   :  { %1432 = vmatprep.subr.bf16.mxu0 %v4881_v58  ;;  %1596 = vmatprep.subr.bf16.mxu1 %v4884_v59  ;;  %v1688_v58 = vld [vmem:[#allocation6 + $0xf0] sm:$0xff]  ;;  %v1689_v59 = vld [vmem:[#allocation6 + $0xf8] sm:$0xff]  ;;  %v4536_v54 = vpack.c.bf16 %v1699_v51, %v1698_v50 }
  0xf7   :  { %v4931_v50 = vld [vmem:[#allocation8 + $0x7c] ss:$28 sps:$4 sm:$0xff]   ;;  %v4926_v51 = vld [vmem:[#allocation8 + $0x70] ss:$28 sps:$4 sm:$0xff]  }
  0xf9   :  { %1433 = vmatpush1.bf16.msra.mxu0 %v4879_v60  ;;  %1597 = vmatpush1.bf16.msra.mxu1 %v4882_v61  ;;  %v4514_v60 = vpack.c.bf16 %v1689_v59, %v1688_v58  ;;  %v1672_v61 = vld [vmem:[#allocation6 + $0x70] sm:$0xff]  ;;  %v1718_v58 = vld [vmem:[#allocation6 + $0x1e0] sm:$0xff]  ;;  %v1719_v59 = vld [vmem:[#allocation6 + $0x1e8] sm:$0xff] }
  0xfa   :  { %1434 = vmatprep.subr.bf16.mxu0 %v4887_v62  ;;  %1598 = vmatprep.subr.bf16.mxu1 %v4890_v63  ;;  %v1673_v62 = vld [vmem:[#allocation6 + $0x78] sm:$0xff] }
  0xfb   :  { %v4516_v63 = vpack.c.bf16 %v1673_v62, %v1672_v61  ;;  %v4542_v62 = vpack.c.bf16 %v1719_v59, %v1718_v58  ;;  %v4943_v58 = vld [vmem:[#allocation8 + $0xec] ss:$28 sps:$4 sm:$0xff]   ;;  %v4938_v59 = vld [vmem:[#allocation8 + $0xe0] ss:$28 sps:$4 sm:$0xff]  }
  0xfd   :  { %1435 = vmatpush1.bf16.msra.mxu0 %v4885_v0  ;;  %1599 = vmatpush1.bf16.msra.mxu1 %v4888_v1  ;;  %v1706_v0 = vld [vmem:[#allocation6 + $0x180] sm:$0xff]  ;;  %v1707_v1 = vld [vmem:[#allocation6 + $0x188] sm:$0xff] }
  0xfe   :  { %1436 = vmatprep.subr.bf16.mxu0 %v4893_v2  ;;  %1600 = vmatprep.subr.bf16.mxu1 %v4896_v3  ;;  %v4518_v2 = vpack.c.bf16 %v1707_v1, %v1706_v0  ;;  %v298_v3 = vlaneseq  ;;  %v1703_v0 = vld [vmem:[#allocation6 + $0x168] sm:$0xff]  ;;  %v1720_v1 = vld [vmem:[#allocation6 + $0x1f0] sm:$0xff] }
 0x101   :  { %1437 = vmatpush1.bf16.msra.mxu0 %v4891_v4  ;;  %1601 = vmatpush1.bf16.msra.mxu1 %v4894_v5  ;;  %v5518_v4 = vshrl.u32 %v298_v3, 7 }
 0x102   :  { %1438 = vmatprep.subr.bf16.mxu0 %v4899_v6  ;;  %1602 = vmatprep.subr.bf16.mxu1 %v4902_v7  ;;  %v5526_v6 = vld [vmem:[%s5640_s2] sm:$0xf] }
 0x103   :  { %v5521_v5 = vsub.s32 0, %v5518_v4  ;;  %v5529_v7 = vsub.s32 1, %v5518_v4  ;;  %v5543_v61 = vsub.s32 2, %v5518_v4 }
 0x105   :  { %1439 = vmatpush1.bf16.msra.mxu0 %v4897_v8  ;;  %1603 = vmatpush1.bf16.msra.mxu1 %v4900_v9  ;;  %v5532_v8 = vsub.s32 3, %v5518_v4  ;;  %v301_v9 = vrot.slane %v5526_v6, %v5521_v5 }
 0x106   :  { %1449 = vmatprep.subr.bf16.mxu0 %v4907_v10  ;;  %1613 = vmatprep.subr.bf16.mxu1 %v4910_v11  ;;  %v305_v10 = vrot.slane %v5526_v6, %v5529_v7 }
 0x107   :  { %v313_v11 = vrot.slane %v5526_v6, %v5532_v8 }
 0x108   :  { %1441 = vmatmul.mubr.bf16.vlgmr.msra.gmra.mrb[0].mxu0 %v3932_v18  ;;  %1605 = vmatmul.mubr.bf16.vlgmr.msra.gmra.mrb[0].mxu1 %v3932_v18 }
 0x109   :  { %1450 = vmatpush1.bf16.msra.mxu0 %v4905_v16  ;;  %1614 = vmatpush1.bf16.msra.mxu1 %v4908_v17 }
 0x10a   :  { %1481 = vmatprep.mubr.bf16.mxu0 %v5382_v13  ;;  %1645 = vmatprep.mubr.bf16.mxu1 %v5382_v13  ;;  %v1663_v13 = vld [vmem:[#allocation6 + $0x28] sm:$0xff] }
 0x10b   :  { %4487 = vmatprep.subr.bf16.mxu1 %v4486_v19  ;;  %v4496_v37 = vpack.c.bf16 %v1663_v13, %v1662_v30  ;;  %v1690_v19 = vld [vmem:[#allocation6 + $0x100] sm:$0xff]  ;;  %v4522_v13 = vpack.c.bf16 %v1709_v25, %v1708_v24 }
 0x114   :  { %4131 = vmatmul.mubr.msk.bf16.vlgmr.msra.gmra.mrb[0].mxu0 %vm1322_vm0, %v4911_v12  ;;  %4132 = vmatmul.mubr.msk.bf16.vlgmr.msra.gmra.mrb[0].mxu1 %vm1322_vm0, %v4911_v12 }
 0x115   :  { %4489 = vmatpush3.bf16.msra.mxu1 %v4488_v26 }
 0x116   :  { %4491 = vmatprep.subr.bf16.mxu1 %v4490_v29  ;;  %v4520_v29 = vpack.c.bf16 %v1691_v20, %v1690_v19  ;;  %v1885_v20 = vld [vmem:[%s5643_s5] sm:$0xff] }
 0x119   :  { %4493 = vmatpush3.bf16.msra.mxu1 %v4492_v31  ;;  %v1692_v31 = vld [vmem:[#allocation6 + $0x110] sm:$0xff] }
 0x11a   :  { %4495 = vmatprep.subr.bf16.mxu1 %v4494_v34  ;;  %v1710_v34 = vld [vmem:[#allocation6 + $0x1a0] sm:$0xff]  ;;  %v4524_v36 = vpack.c.bf16 %v1693_v32, %v1692_v31  ;;  %v5383_v31 = vmov 0.0  }
 0x11b   :  { %1990 = vmatprep.mubr.f32.mxu0 %v5383_v31 }
 0x11d   :  { %4497 = vmatpush3.bf16.msra.mxu1 %v4496_v37  ;;  %v4526_v37 = vpack.c.bf16 %v1711_v35, %v1710_v34 }
 0x11e   :  { %4499 = vmatprep.subr.bf16.mxu1 %v4498_v40  ;;  %v1712_v40 = vld [vmem:[#allocation6 + $0x1b0] sm:$0xff] }
 0x121   :  { %4501 = vmatpush3.bf16.msra.mxu1 %v4500_v43  ;;  %v4530_v43 = vpack.c.bf16 %v1713_v41, %v1712_v40  ;;  %v4914_v41 = vld [vmem:[#allocation8] ss:$28 sps:$4 sm:$0xff]  }
 0x122   :  { %4503 = vmatprep.subr.bf16.mxu1 %v4502_v46  ;;  %v1714_v46 = vld [vmem:[#allocation6 + $0x1c0] sm:$0xff] }
 0x125   :  { %4505 = vmatpush3.bf16.msra.mxu1 %v4504_v49  ;;  %v4534_v49 = vpack.c.bf16 %v1715_v47, %v1714_v46  ;;  %v4925_v46 = vld [vmem:[#allocation8 + $0x44] ss:$28 sps:$4 sm:$0xff]   ;;  %v4920_v47 = vld [vmem:[#allocation8 + $0x38] ss:$28 sps:$4 sm:$0xff]  }
 0x126   :  { %4507 = vmatprep.subr.bf16.mxu1 %v4506_v52  ;;  %v1716_v52 = vld [vmem:[#allocation6 + $0x1d0] sm:$0xff] }
 0x129   :  { %4509 = vmatpush3.bf16.msra.mxu1 %v4508_v55  ;;  %v4538_v55 = vpack.c.bf16 %v1717_v53, %v1716_v52  ;;  %v4929_v52 = vld [vmem:[#allocation8 + $0x78] ss:$28 sps:$4 sm:$0xff]   ;;  %v4934_v53 = vld [vmem:[#allocation8 + $0xac] ss:$28 sps:$4 sm:$0xff]  }
 0x12a   :  { %4511 = vmatprep.subr.bf16.mxu1 %v4510_v56  ;;  %v1700_v56 = vld [vmem:[#allocation6 + $0x150] sm:$0xff] }
 0x12d   :  { %4513 = vmatpush3.bf16.msra.mxu1 %v4512_v57  ;;  %v1701_v57 = vld [vmem:[#allocation6 + $0x158] sm:$0xff] }
 0x12e   :  { %4515 = vmatprep.subr.bf16.mxu1 %v4514_v60  ;;  %v4540_v60 = vpack.c.bf16 %v1701_v57, %v1700_v56  ;;  %v4935_v56 = vld [vmem:[#allocation8 + $0xb0] ss:$28 sps:$4 sm:$0xff]   ;;  %v4940_v57 = vld [vmem:[#allocation8 + $0xe4] ss:$28 sps:$4 sm:$0xff]  }
 0x131   :  { %4517 = vmatpush3.bf16.msra.mxu1 %v4516_v63  ;;  %v1702_v63 = vld [vmem:[#allocation6 + $0x160] sm:$0xff] }
 0x132   :  { %4519 = vmatprep.subr.bf16.mxu1 %v4518_v2  ;;  %v1721_v2 = vld [vmem:[#allocation6 + $0x1f8] sm:$0xff] }
 0x1e7   :  { %v1483_v14 = vpop.f32.mrb[0].mxu0  ;;  %v5540_v15 = vpop.f32.mrb[0].mxu1 }
 0x1e8   :  { %v4550_v16 = vadd.f32 %v1483_v14, %v301_v9  ;;  %v1485_v17 = vpop.f32.mrb[1].mxu0  ;;  %v1649_v18 = vpop.f32.mrb[1].mxu1  ;;  %v4544_v9 = vpack.c.bf16 %v1703_v0, %v1702_v63  ;;  %v1704_v14 = vld [vmem:[#allocation6 + $0x170] sm:$0xff]  ;;  %v4949_v63 = vld [vmem:[#allocation8 + $0x124] ss:$28 sps:$4 sm:$0xff]  }
 0x1e9   :  { %v4551_v21 = vadd.f32 %v1485_v17, %v305_v10  ;;  %v4553_v22 = vadd.f32 %v1649_v18, %v313_v11  ;;  %v1487_v23 = vpop.f32.mrb[2].mxu0  ;;  %v1651_v12 = vpop.f32.mrb[2].mxu1  ;;  %v309_v10 = vrot.slane %v5526_v6, %v5543_v61  ;;  %v4546_v11 = vpack.c.bf16 %v1721_v2, %v1720_v1  ;;  %v4944_v0 = vld [vmem:[#allocation8 + $0x118] ss:$28 sps:$4 sm:$0xff]   ;;  %v4947_v1 = vld [vmem:[#allocation8 + $0x120] ss:$28 sps:$4 sm:$0xff]  }
 0x1ea   :  { %v1488_v26 = vpop.f32.mrb[3].mxu0  ;;  %v1652_v27 = vpop.f32.mrb[3].mxu1  ;;  %v1654_v30 = vmax.f32 %v4550_v16, 0.0  ;;  %v1705_v16 = vld [vmem:[#allocation6 + $0x178] sm:$0xff]  ;;  %v4952_v2 = vld [vmem:[#allocation8 + $0x154] ss:$28 sps:$4 sm:$0xff]  }
 0x1eb   :  { %v1655_v28 = vmax.f32 %v4551_v21, 0.0  ;;  %v1657_v33 = vmax.f32 %v4553_v22, 0.0  ;;  %v4548_v17 = vpack.c.bf16 %v1705_v16, %v1704_v14  ;;  %v4552_v18 = vadd.f32 %v5540_v15, %v309_v10  ;;  %v4133_v15 = vld [vmem:[%s5642_s4] ss:$0 sm:$0xff]  ;;  %s5384_s4 = smov 124  }
 0x1ec   :  { %v1911_v21 = vcombine.high %v1885_v20, %v1885_v20  ;;  %v4950_v10 = vld [vmem:[#allocation8 + $0x150] ss:$28 sps:$4 sm:$0xff]  }
 0x1ed   :  { %1793 = vmatprep.mubr.f32.mxu1 %v1655_v28  ;;  %v1656_v19 = vmax.f32 %v4552_v18, 0.0  ;;  %v4958_v14 = vld [vmem:[#allocation8 + $0x18c] ss:$28 sps:$4 sm:$0xff]   ;;  %v4961_v16 = vld [vmem:[#allocation8 + $0x194] ss:$28 sps:$4 sm:$0xff]  }
 0x1ee   :  { %1794 = vmatmul.mubr.f32.vlgmr.msra.gmra.mrb[4].mxu1 %v1654_v30  ;;  %4135 = vmatprep.subr.msk.mxu0 %vm1917_vm1, %v1911_v21  ;;  %v4959_v18 = vld [vmem:[#allocation8 + $0x190] ss:$28 sps:$4 sm:$0xff]   ;;  %v4962_v21 = vld [vmem:[#allocation8 + $0x1c0] ss:$28 sps:$4 sm:$0xff]  }
 0x1ef   :  { %4521 = vmatpush3.bf16.msra.mxu1 %v4520_v29  ;;  %1863 = vmatprep.mubr.f32.mxu1 %v1657_v33  ;;  %v1886_v29 = vld [vmem:[%s5643_s5 + $0x8] sm:$0xff]  ;;  %v1872_v33 = vld [vmem:[%s5648_s10] sm:$0xff] }
 0x1f0   :  { %4523 = vmatprep.subr.bf16.mxu1 %v4522_v13  ;;  %4136 = vmatpush1.msk.msra.mxu0 %vm1917_vm1, %v1885_v20  ;;  %v1912_v13 = vcombine.high %v1886_v29, %v1886_v29  ;;  %v4967_v20 = vld [vmem:[#allocation8 + $0x1cc] ss:$28 sps:$4 sm:$0xff]  }
 0x1f3   :  { %4525 = vmatpush3.bf16.msra.mxu1 %v4524_v36  ;;  %v1880_v36 = vstv %s1879_s25 }
 0x1f4   :  { %4527 = vmatprep.subr.bf16.mxu1 %v4526_v37 }
 0x1f7   :  { %4529 = vmatpush3.bf16.msra.mxu1 %v4528_v42  ;;  %v4916_v42 = vld [vmem:[#allocation8 + $0x4] ss:$28 sps:$4 sm:$0xff]  }
 0x1f8   :  { %4531 = vmatprep.subr.bf16.mxu1 %v4530_v43  ;;  %v4917_v43 = vld [vmem:[#allocation8 + $0x8] ss:$28 sps:$4 sm:$0xff]   ;;  %3521 = vmatprep.subr.bf16.mxu0 %v4916_v42  ;;  %v4998_v42 = vld [vmem:[#allocation8 + $0x310] ss:$28 sps:$4 sm:$0xff]  }
 0x1fb   :  { %4533 = vmatpush3.bf16.msra.mxu1 %v4532_v48  ;;  %v4923_v48 = vld [vmem:[#allocation8 + $0x40] ss:$28 sps:$4 sm:$0xff]  }
 0x1fc   :  { %4535 = vmatprep.subr.bf16.mxu1 %v4534_v49  ;;  %v4928_v49 = vld [vmem:[#allocation8 + $0x74] ss:$28 sps:$4 sm:$0xff]  }
 0x1ff   :  { %4537 = vmatpush3.bf16.msra.mxu1 %v4536_v54  ;;  %v4937_v54 = vld [vmem:[#allocation8 + $0xb4] ss:$28 sps:$4 sm:$0xff]  }
 0x200   :  { %4539 = vmatprep.subr.bf16.mxu1 %v4538_v55  ;;  %v4932_v55 = vld [vmem:[#allocation8 + $0xa8] ss:$28 sps:$4 sm:$0xff]  }
 0x203   :  { %4541 = vmatpush3.bf16.msra.mxu1 %v4540_v60  ;;  %v4941_v60 = vld [vmem:[#allocation8 + $0xe8] ss:$28 sps:$4 sm:$0xff]  }
 0x204   :  { %4543 = vmatprep.subr.bf16.mxu1 %v4542_v62  ;;  %v4946_v62 = vld [vmem:[#allocation8 + $0x11c] ss:$28 sps:$4 sm:$0xff]  }
 0x207   :  { %4545 = vmatpush3.bf16.msra.mxu1 %v4544_v9  ;;  %v4955_v9 = vld [vmem:[#allocation8 + $0x15c] ss:$28 sps:$4 sm:$0xff]  }
 0x208   :  { %4547 = vmatprep.subr.bf16.mxu1 %v4546_v11  ;;  %v4953_v11 = vld [vmem:[#allocation8 + $0x158] ss:$28 sps:$4 sm:$0xff]  }
 0x20b   :  { %4549 = vmatpush3.bf16.msra.mxu1 %v4548_v17  ;;  %v4956_v17 = vld [vmem:[#allocation8 + $0x188] ss:$28 sps:$4 sm:$0xff]  }
 0x20c   :  { %4138 = vmatprep.subr.msk.mxu1 %vm1917_vm1, %v1912_v13  ;;  %v4980_v13 = vld [vmem:[#allocation8 + $0x268] ss:$28 sps:$4 sm:$0xff]  }
 0x20e   :  { %1864 = vmatmul.mubr.f32.vlgmr.msra.gmra.mrb[6].mxu1 %v1656_v19  ;;  %v4964_v19 = vld [vmem:[#allocation8 + $0x1c4] ss:$28 sps:$4 sm:$0xff]  }
 0x20f   :  { %4139 = vmatpush1.msk.msra.mxu1 %vm1917_vm1, %v1886_v29  ;;  %2061 = vmatprep.mubr.f32.mxu1 %v5383_v31  ;;  %v4982_v29 = vld [vmem:[#allocation8 + $0x26c] ss:$28 sps:$4 sm:$0xff]  }
 0x210   :  { %3603 = vmatprep.subr.bf16.mxu1 %v4919_v44  ;;  %v4983_v31 = vld [vmem:[#allocation8 + $0x270] ss:$28 sps:$4 sm:$0xff]  }
 0x211   :  { %v5006_v44 = vld [vmem:[#allocation8 + $0x34c] ss:$28 sps:$4 sm:$0xff]  }
 0x2c1   :  { %v4404_v6 = vpop.f32.mrb[4].mxu1 }
 0x2c2   :  { %v4405_v22 = vpop.f32.mrb[5].mxu1 }
 0x2c3   :  { %v4406_v23 = vadd.f32 %v4405_v22, %v4404_v6  ;;  %v4965_v6 = vld [vmem:[#allocation8 + $0x1c8] ss:$28 sps:$4 sm:$0xff]   ;;  %v4970_v22 = vld [vmem:[#allocation8 + $0x1fc] ss:$28 sps:$4 sm:$0xff]  }
 0x2c5   :  { %v1796_v25 = vadd.f32 %v4406_v23, %v4133_v15  ;;  %v4973_v23 = vld [vmem:[#allocation8 + $0x204] ss:$28 sps:$4 sm:$0xff]   ;;  %v4968_v15 = vld [vmem:[#allocation8 + $0x1f8] ss:$28 sps:$4 sm:$0xff]  }
 0x2e1   :  { %v4439_v12 = vpop.f32.mrb[6].mxu1 }
 0x2e2   :  { %v4440_v24 = vpop.f32.mrb[7].mxu1 }
 0x2e3   :  { %v4441_v26 = vadd.f32 %v4440_v24, %v4439_v12  ;;  %v4971_v12 = vld [vmem:[#allocation8 + $0x200] ss:$28 sps:$4 sm:$0xff]   ;;  %v4976_v24 = vld [vmem:[#allocation8 + $0x234] ss:$28 sps:$4 sm:$0xff]  }
 0x2e5   :  { %v5556_v27 = vadd.f32 %v4441_v26, %v1796_v25  ;;  %v4979_v25 = vld [vmem:[#allocation8 + $0x23c] ss:$28 sps:$4 sm:$0xff]   ;;  %v4974_v26 = vld [vmem:[#allocation8 + $0x230] ss:$28 sps:$4 sm:$0xff]  }
 0x2e7   :  { %v1869_v28 = vmul.f32 0.5, %v5556_v27 }
 0x2e9   :  { %v1870_v30 = vmul.f32 1.442695, %v1869_v28  ;;  %v4977_v28 = vld [vmem:[#allocation8 + $0x238] ss:$28 sps:$4 sm:$0xff]  }
 0x2eb   :  { %5234 = vpow2.f32 %v1870_v30  ;;  %v4985_v30 = vld [vmem:[#allocation8 + $0x274] ss:$28 sps:$4 sm:$0xff]  }
 0x2f5   :  { %v5235_v32 = vpop.eup %5234 }
 0x2f6   :  { %1874 = vrot.lane.b32.xlu0 %v5235_v32, %s5384_s4  ;;  %v4988_v32 = vld [vmem:[#allocation8 + $0x2a4] ss:$28 sps:$4 sm:$0xff]  }
 0x368   :  { %v1875_v34 = vpop.permute.xlu0 %1874 }
 0x369   :  { %v1877_v35 = vmul.f32 %v1875_v34, %v1872_v33  ;;  %v4991_v33 = vld [vmem:[#allocation8 + $0x2ac] ss:$28 sps:$4 sm:$0xff]   ;;  %v4986_v34 = vld [vmem:[#allocation8 + $0x2a0] ss:$28 sps:$4 sm:$0xff]  }
 0x36b   :  { %v1878_v37 = vadd.f32 %v1877_v35, %v5556_v27  ;;  %v4989_v35 = vld [vmem:[#allocation8 + $0x2a8] ss:$28 sps:$4 sm:$0xff]  }
 0x36d   :  { %4137 = vmatmul.mubr.msk.f32.vlgmr.msra.gmra.mrb[4].mxu0 %vm1913_vm2, %v1878_v37  ;;  %4140 = vmatmul.mubr.msk.f32.vlgmr.msra.gmra.mrb[8].mxu1 %vm1913_vm2, %v1878_v37  ;;  %v1881_v39 = vmul.f32 %v1880_v36, %v1878_v37  ;;  %v4994_v36 = vld [vmem:[#allocation8 + $0x2dc] ss:$28 sps:$4 sm:$0xff]   ;;  %v4997_v37 = vld [vmem:[#allocation8 + $0x2e4] ss:$28 sps:$4 sm:$0xff]  }
 0x36e   :  { %3522 = vmatpush1.bf16.msra.mxu0 %v4914_v41  ;;  %3604 = vmatpush1.bf16.msra.mxu1 %v4917_v43  ;;  %v5003_v41 = vld [vmem:[#allocation8 + $0x31c] ss:$28 sps:$4 sm:$0xff]  }
 0x36f   :  { %v1884_v40 = vadd.f32 %v1883_v38, %v1881_v39  ;;  %3523 = vmatprep.subr.bf16.mxu0 %v4922_v45  ;;  %3605 = vmatprep.subr.bf16.mxu1 %v4925_v46  ;;  %v4992_v38 = vld [vmem:[#allocation8 + $0x2d8] ss:$28 sps:$4 sm:$0xff]   ;;  %v4995_v39 = vld [vmem:[#allocation8 + $0x2e0] ss:$28 sps:$4 sm:$0xff]   ;;  %v5004_v46 = vld [vmem:[#allocation8 + $0x348] ss:$28 sps:$4 sm:$0xff]  }
 0x370   :  { %v5001_v43 = vld [vmem:[#allocation8 + $0x318] ss:$28 sps:$4 sm:$0xff]  }
 0x371   :  { %3901 = vperm.xlu0 %4610, %v1884_v40   ;;  %v5000_v40 = vld [vmem:[#allocation8 + $0x314] ss:$28 sps:$4 sm:$0xff]  }
 0x372   :  { %3524 = vmatpush1.bf16.msra.mxu0 %v4920_v47  ;;  %3606 = vmatpush1.bf16.msra.mxu1 %v4923_v48  ;;  %v5009_v45 = vld [vmem:[#allocation8 + $0x354] ss:$28 sps:$4 sm:$0xff]   ;;  %v5012_v48 = vld [vmem:[#allocation8 + $0x384] ss:$28 sps:$4 sm:$0xff]  }
 0x373   :  { %3525 = vmatprep.subr.bf16.mxu0 %v4928_v49  ;;  %3607 = vmatprep.subr.bf16.mxu1 %v4931_v50  ;;  %v5007_v47 = vld [vmem:[#allocation8 + $0x350] ss:$28 sps:$4 sm:$0xff]   ;;  %v3897_v50 = vand.u32 127, %v298_v3 }
 0x374   :  { %v5015_v49 = vld [vmem:[#allocation8 + $0x38c] ss:$28 sps:$4 sm:$0xff]  }
 0x375   :  { %vm3898_vm3 = vcmp.eq.s32.totalorder %v3897_v50, 8  ;;  %v5064_v50 = vld [vmem:[#allocation8 + $0x578] ss:$28 sps:$4 sm:$0xff]  }
 0x376   :  { %3526 = vmatpush1.bf16.msra.mxu0 %v4926_v51  ;;  %3608 = vmatpush1.bf16.msra.mxu1 %v4929_v52 }
 0x377   :  { %3527 = vmatprep.subr.bf16.mxu0 %v4934_v53  ;;  %3609 = vmatprep.subr.bf16.mxu1 %v4937_v54  ;;  %v1887_v54 = vld [vmem:[%s5644_s6] sm:$0xf] }
 0x378   :  { %v1904_v3 = vrot.slane %v1887_v54, %v5532_v8 }
 0x37a   :  { %3528 = vmatpush1.bf16.msra.mxu0 %v4932_v55  ;;  %3610 = vmatpush1.bf16.msra.mxu1 %v4935_v56  ;;  %v1892_v55 = vrot.slane %v1887_v54, %v5521_v5  ;;  %v1900_v56 = vrot.slane %v1887_v54, %v5543_v61 }
 0x37b   :  { %3529 = vmatprep.subr.bf16.mxu0 %v4940_v57  ;;  %3611 = vmatprep.subr.bf16.mxu1 %v4943_v58  ;;  %v1896_v57 = vrot.slane %v1887_v54, %v5529_v7  ;;  %v5070_v54 = vld [vmem:[#allocation8 + $0x5b0] ss:$28 sps:$4 sm:$0xff]  }
 0x37e   :  { %3530 = vmatpush1.bf16.msra.mxu0 %v4938_v59  ;;  %3612 = vmatpush1.bf16.msra.mxu1 %v4941_v60 }
 0x37f   :  { %3531 = vmatprep.subr.bf16.mxu0 %v4946_v62  ;;  %3613 = vmatprep.subr.bf16.mxu1 %v4949_v63 }
 0x382   :  { %3532 = vmatpush1.bf16.msra.mxu0 %v4944_v0  ;;  %3614 = vmatpush1.bf16.msra.mxu1 %v4947_v1 }
 0x383   :  { %3533 = vmatprep.subr.bf16.mxu0 %v4952_v2  ;;  %3615 = vmatprep.subr.bf16.mxu1 %v4955_v9 }
 0x386   :  { %3534 = vmatpush1.bf16.msra.mxu0 %v4950_v10  ;;  %3616 = vmatpush1.bf16.msra.mxu1 %v4953_v11 }
 0x387   :  { %3535 = vmatprep.subr.bf16.mxu0 %v4958_v14  ;;  %3617 = vmatprep.subr.bf16.mxu1 %v4961_v16  ;;  %v5010_v14 = vld [vmem:[#allocation8 + $0x380] ss:$28 sps:$4 sm:$0xff]   ;;  %v5013_v16 = vld [vmem:[#allocation8 + $0x388] ss:$28 sps:$4 sm:$0xff]  }
 0x38a   :  { %3536 = vmatpush1.bf16.msra.mxu0 %v4956_v17  ;;  %3618 = vmatpush1.bf16.msra.mxu1 %v4959_v18  ;;  %v5018_v18 = vld [vmem:[#allocation8 + $0x3bc] ss:$28 sps:$4 sm:$0xff]  }
 0x38b   :  { %3537 = vmatprep.subr.bf16.mxu0 %v4964_v19  ;;  %3619 = vmatprep.subr.bf16.mxu1 %v4967_v20  ;;  %v5021_v19 = vld [vmem:[#allocation8 + $0x3c4] ss:$28 sps:$4 sm:$0xff]  }
 0x38e   :  { %3538 = vmatpush1.bf16.msra.mxu0 %v4962_v21  ;;  %3620 = vmatpush1.bf16.msra.mxu1 %v4965_v6  ;;  %v5016_v21 = vld [vmem:[#allocation8 + $0x3b8] ss:$28 sps:$4 sm:$0xff]   ;;  %v5019_v6 = vld [vmem:[#allocation8 + $0x3c0] ss:$28 sps:$4 sm:$0xff]  }
 0x38f   :  { %3539 = vmatprep.subr.bf16.mxu0 %v4970_v22  ;;  %3621 = vmatprep.subr.bf16.mxu1 %v4973_v23  ;;  %v5024_v22 = vld [vmem:[#allocation8 + $0x3f4] ss:$28 sps:$4 sm:$0xff]   ;;  %v5027_v23 = vld [vmem:[#allocation8 + $0x3fc] ss:$28 sps:$4 sm:$0xff]  }
 0x392   :  { %3540 = vmatpush1.bf16.msra.mxu0 %v4968_v15  ;;  %3622 = vmatpush1.bf16.msra.mxu1 %v4971_v12  ;;  %v5022_v15 = vld [vmem:[#allocation8 + $0x3f0] ss:$28 sps:$4 sm:$0xff]   ;;  %v5025_v12 = vld [vmem:[#allocation8 + $0x3f8] ss:$28 sps:$4 sm:$0xff]  }
 0x393   :  { %3541 = vmatprep.subr.bf16.mxu0 %v4976_v24  ;;  %3623 = vmatprep.subr.bf16.mxu1 %v4979_v25  ;;  %v5030_v24 = vld [vmem:[#allocation8 + $0x42c] ss:$28 sps:$4 sm:$0xff]   ;;  %v5033_v25 = vld [vmem:[#allocation8 + $0x434] ss:$28 sps:$4 sm:$0xff]  }
 0x396   :  { %3542 = vmatpush1.bf16.msra.mxu0 %v4974_v26  ;;  %3624 = vmatpush1.bf16.msra.mxu1 %v4977_v28  ;;  %v5028_v26 = vld [vmem:[#allocation8 + $0x428] ss:$28 sps:$4 sm:$0xff]   ;;  %v5031_v28 = vld [vmem:[#allocation8 + $0x430] ss:$28 sps:$4 sm:$0xff]  }
 0x397   :  { %3543 = vmatprep.subr.bf16.mxu0 %v4982_v29  ;;  %3625 = vmatprep.subr.bf16.mxu1 %v4985_v30  ;;  %v5036_v29 = vld [vmem:[#allocation8 + $0x464] ss:$28 sps:$4 sm:$0xff]   ;;  %v5039_v30 = vld [vmem:[#allocation8 + $0x46c] ss:$28 sps:$4 sm:$0xff]  }
 0x39a   :  { %3544 = vmatpush1.bf16.msra.mxu0 %v4980_v13  ;;  %3626 = vmatpush1.bf16.msra.mxu1 %v4983_v31  ;;  %v5034_v13 = vld [vmem:[#allocation8 + $0x460] ss:$28 sps:$4 sm:$0xff]   ;;  %v5037_v31 = vld [vmem:[#allocation8 + $0x468] ss:$28 sps:$4 sm:$0xff]  }
 0x39b   :  { %3545 = vmatprep.subr.bf16.mxu0 %v4988_v32  ;;  %3627 = vmatprep.subr.bf16.mxu1 %v4991_v33  ;;  %v5042_v32 = vld [vmem:[#allocation8 + $0x49c] ss:$28 sps:$4 sm:$0xff]   ;;  %v5045_v33 = vld [vmem:[#allocation8 + $0x4a4] ss:$28 sps:$4 sm:$0xff]  }
 0x39e   :  { %3546 = vmatpush1.bf16.msra.mxu0 %v4986_v34  ;;  %3628 = vmatpush1.bf16.msra.mxu1 %v4989_v35  ;;  %v5040_v34 = vld [vmem:[#allocation8 + $0x498] ss:$28 sps:$4 sm:$0xff]   ;;  %v5043_v35 = vld [vmem:[#allocation8 + $0x4a0] ss:$28 sps:$4 sm:$0xff]  }
 0x39f   :  { %3547 = vmatprep.subr.bf16.mxu0 %v4994_v36  ;;  %3629 = vmatprep.subr.bf16.mxu1 %v4997_v37  ;;  %v5048_v36 = vld [vmem:[#allocation8 + $0x4d4] ss:$28 sps:$4 sm:$0xff]   ;;  %v5051_v37 = vld [vmem:[#allocation8 + $0x4dc] ss:$28 sps:$4 sm:$0xff]  }
 0x3a2   :  { %3548 = vmatpush1.bf16.msra.mxu0 %v4992_v38  ;;  %3630 = vmatpush1.bf16.msra.mxu1 %v4995_v39  ;;  %v5046_v38 = vld [vmem:[#allocation8 + $0x4d0] ss:$28 sps:$4 sm:$0xff]   ;;  %v5049_v39 = vld [vmem:[#allocation8 + $0x4d8] ss:$28 sps:$4 sm:$0xff]  }
 0x3a3   :  { %3549 = vmatprep.subr.bf16.mxu0 %v5000_v40  ;;  %3631 = vmatprep.subr.bf16.mxu1 %v5003_v41  ;;  %v5054_v40 = vld [vmem:[#allocation8 + $0x50c] ss:$28 sps:$4 sm:$0xff]   ;;  %v5057_v41 = vld [vmem:[#allocation8 + $0x514] ss:$28 sps:$4 sm:$0xff]  }
 0x3a6   :  { %3550 = vmatpush1.bf16.msra.mxu0 %v4998_v42  ;;  %3632 = vmatpush1.bf16.msra.mxu1 %v5001_v43  ;;  %v5052_v42 = vld [vmem:[#allocation8 + $0x508] ss:$28 sps:$4 sm:$0xff]   ;;  %v5055_v43 = vld [vmem:[#allocation8 + $0x510] ss:$28 sps:$4 sm:$0xff]  }
 0x3a7   :  { %3551 = vmatprep.subr.bf16.mxu0 %v5006_v44  ;;  %3633 = vmatprep.subr.bf16.mxu1 %v5009_v45  ;;  %v5060_v44 = vld [vmem:[#allocation8 + $0x544] ss:$28 sps:$4 sm:$0xff]   ;;  %v5063_v45 = vld [vmem:[#allocation8 + $0x54c] ss:$28 sps:$4 sm:$0xff]  }
 0x3aa   :  { %3552 = vmatpush1.bf16.msra.mxu0 %v5004_v46  ;;  %3634 = vmatpush1.bf16.msra.mxu1 %v5007_v47  ;;  %v5058_v46 = vld [vmem:[#allocation8 + $0x540] ss:$28 sps:$4 sm:$0xff]   ;;  %v5061_v47 = vld [vmem:[#allocation8 + $0x548] ss:$28 sps:$4 sm:$0xff]  }
 0x3ab   :  { %3562 = vmatprep.subr.bf16.mxu0 %v5012_v48  ;;  %3644 = vmatprep.subr.bf16.mxu1 %v5015_v49  ;;  %v5066_v48 = vld [vmem:[#allocation8 + $0x57c] ss:$28 sps:$4 sm:$0xff]   ;;  %v5069_v49 = vld [vmem:[#allocation8 + $0x584] ss:$28 sps:$4 sm:$0xff]  }
 0x3f0   :  { %v3902_v51 = vpop.permute.xlu0 %3901 }
 0x3f1   :  { %v3904_v52 = vsel %vm3898_vm3, %v3902_v51, 0.0  ;;  %v5067_v51 = vld [vmem:[#allocation8 + $0x580] ss:$28 sps:$4 sm:$0xff]  }
 0x3f2   :  { %v3905_v53 = vadd.f32 %v3904_v52, %v5556_v27  ;;  %v5072_v52 = vld [vmem:[#allocation8 + $0x5b4] ss:$28 sps:$4 sm:$0xff]  }
 0x3f4   :  { %3906 = vst [vmem:[%s5650_s12] sm:$0xff] %v3905_v53  ;;  %v5075_v53 = vld [vmem:[#allocation8 + $0x5bc] ss:$28 sps:$4 sm:$0xff]  }
 0x440   :  { %v1992_v58 = vpop.f32.mrb[4].mxu0  ;;  %v2063_v59 = vpop.f32.mrb[8].mxu1 }
 0x441   :  { %v1993_v60 = vadd.f32 %v1992_v58, %v1892_v55  ;;  %v5580_v27 = vadd.f32 %v2063_v59, %v1900_v56  ;;  %v1994_v62 = vpop.f32.mrb[5].mxu0  ;;  %v2065_v63 = vpop.f32.mrb[9].mxu1  ;;  %v5073_v55 = vld [vmem:[#allocation8 + $0x5b8] ss:$28 sps:$4 sm:$0xff]   ;;  %v5078_v56 = vld [vmem:[#allocation8 + $0x5ec] ss:$28 sps:$4 sm:$0xff]  }
 0x442   :  { %v1995_v0 = vadd.f32 %v1994_v62, %v1896_v57  ;;  %v2066_v1 = vadd.f32 %v2065_v63, %v1904_v3  ;;  %v5081_v57 = vld [vmem:[#allocation8 + $0x5f4] ss:$28 sps:$4 sm:$0xff]   ;;  %v5076_v3 = vld [vmem:[#allocation8 + $0x5e8] ss:$28 sps:$4 sm:$0xff]   ;;  %v5082_v62 = vld [vmem:[#allocation8 + $0x620] ss:$28 sps:$4 sm:$0xff]  }
 0x443   :  { %v2068_v2 = vmax.f32 %v1993_v60, 0.0  ;;  %v5079_v58 = vld [vmem:[#allocation8 + $0x5f0] ss:$28 sps:$4 sm:$0xff]   ;;  %v5084_v59 = vld [vmem:[#allocation8 + $0x624] ss:$28 sps:$4 sm:$0xff]  }
 0x444   :  { %v2069_v9 = vmax.f32 %v1995_v0, 0.0  ;;  %v2071_v10 = vmax.f32 %v2066_v1, 0.0  ;;  %v5087_v60 = vld [vmem:[#allocation8 + $0x62c] ss:$28 sps:$4 sm:$0xff]   ;;  %v5090_v0 = vld [vmem:[#allocation8 + $0x65c] ss:$28 sps:$4 sm:$0xff]  }
 0x445   :  { %v5584_v17 = vpack.c.bf16 %v2068_v2, %v2068_v2  ;;  %v5085_v63 = vld [vmem:[#allocation8 + $0x628] ss:$28 sps:$4 sm:$0xff]   ;;  %v5088_v2 = vld [vmem:[#allocation8 + $0x658] ss:$28 sps:$4 sm:$0xff]  }
 0x446   :  { %v5582_v11 = vpack.c.bf16 %v2069_v9, %v2069_v9  ;;  %v5588_v20 = vpack.c.bf16 %v2071_v10, %v2071_v10  ;;  %v5093_v1 = vld [vmem:[#allocation8 + $0x664] ss:$28 sps:$4 sm:$0xff]   ;;  %v5096_v10 = vld [vmem:[#allocation8 + $0x694] ss:$28 sps:$4 sm:$0xff]  }
 0x447   :  { %v5091_v9 = vld [vmem:[#allocation8 + $0x660] ss:$28 sps:$4 sm:$0xff]  }
 0x448   :  { %3553 = vmatprep.mubr.bf16.mxu0 %v5582_v11  ;;  %3635 = vmatprep.mubr.bf16.mxu1 %v5582_v11 }
 0x449   :  { %3554 = vmatmul.mubr.bf16.vlgmr.msra.gmra.mrb[8].mxu0 %v5584_v17  ;;  %3636 = vmatmul.mubr.bf16.vlgmr.msra.gmra.mrb[12].mxu1 %v5584_v17 }
 0x44a   :  { %3563 = vmatpush1.bf16.msra.mxu0 %v5010_v14  ;;  %3645 = vmatpush1.bf16.msra.mxu1 %v5013_v16  ;;  %v5099_v14 = vld [vmem:[#allocation8 + $0x69c] ss:$28 sps:$4 sm:$0xff]   ;;  %v5094_v16 = vld [vmem:[#allocation8 + $0x690] ss:$28 sps:$4 sm:$0xff]  }
 0x44b   :  { %3594 = vmatprep.mubr.bf16.mxu0 %v5588_v20  ;;  %3676 = vmatprep.mubr.bf16.mxu1 %v5588_v20 }
 0x44c   :  { %3564 = vmatprep.subr.bf16.mxu0 %v5018_v18  ;;  %3646 = vmatprep.subr.bf16.mxu1 %v5021_v19  ;;  %v5097_v18 = vld [vmem:[#allocation8 + $0x698] ss:$28 sps:$4 sm:$0xff]   ;;  %v5102_v19 = vld [vmem:[#allocation8 + $0x6cc] ss:$28 sps:$4 sm:$0xff]  }
 0x44e   :  { %3565 = vmatpush1.bf16.msra.mxu0 %v5016_v21  ;;  %3647 = vmatpush1.bf16.msra.mxu1 %v5019_v6  ;;  %v5105_v21 = vld [vmem:[#allocation8 + $0x6d4] ss:$28 sps:$4 sm:$0xff]   ;;  %v5100_v6 = vld [vmem:[#allocation8 + $0x6c8] ss:$28 sps:$4 sm:$0xff]  }
 0x44f   :  { %3566 = vmatprep.subr.bf16.mxu0 %v5024_v22  ;;  %3648 = vmatprep.subr.bf16.mxu1 %v5027_v23  ;;  %v5103_v22 = vld [vmem:[#allocation8 + $0x6d0] ss:$28 sps:$4 sm:$0xff]   ;;  %v2070_v23 = vmax.f32 %v5580_v27, 0.0  ;;  %v5111_v27 = vld [vmem:[#allocation8 + $0x48] ss:$28 sps:$4 sm:$0xff]  }
 0x452   :  { %3567 = vmatpush1.bf16.msra.mxu0 %v5022_v15  ;;  %3649 = vmatpush1.bf16.msra.mxu1 %v5025_v12  ;;  %v5108_v15 = vld [vmem:[#allocation8 + $0x14] ss:$28 sps:$4 sm:$0xff]  }
 0x453   :  { %3568 = vmatprep.subr.bf16.mxu0 %v5030_v24  ;;  %3650 = vmatprep.subr.bf16.mxu1 %v5033_v25  ;;  %v5109_v12 = vld [vmem:[#allocation8 + $0x1d8] ss:$28 sps:$4 sm:$0xff]   ;;  %v5106_v24 = vld [vmem:[#allocation8 + $0x10] ss:$28 sps:$4 sm:$0xff]   ;;  %v5595_v25 = vpack.c.bf16 %v2070_v23, %v2070_v23 }
 0x454   :  { %v5175_v23 = vld [vmem:[#allocation8 + $0x4b0] ss:$28 sps:$4 sm:$0xff]  }
 0x456   :  { %3569 = vmatpush1.bf16.msra.mxu0 %v5028_v26  ;;  %3651 = vmatpush1.bf16.msra.mxu1 %v5031_v28  ;;  %v5110_v26 = vld [vmem:[#allocation8 + $0x18] ss:$28 sps:$4 sm:$0xff]   ;;  %v5113_v28 = vld [vmem:[#allocation8 + $0x4c] ss:$28 sps:$4 sm:$0xff]  }
 0x457   :  { %3570 = vmatprep.subr.bf16.mxu0 %v5036_v29  ;;  %3652 = vmatprep.subr.bf16.mxu1 %v5039_v30  ;;  %v5114_v29 = vld [vmem:[#allocation8 + $0x210] ss:$28 sps:$4 sm:$0xff]  }
 0x458   :  { %v5115_v30 = vld [vmem:[#allocation8 + $0x50] ss:$28 sps:$4 sm:$0xff]  }
 0x45a   :  { %3571 = vmatpush1.bf16.msra.mxu0 %v5034_v13  ;;  %3653 = vmatpush1.bf16.msra.mxu1 %v5037_v31  ;;  %v5118_v13 = vld [vmem:[#allocation8 + $0x84] ss:$28 sps:$4 sm:$0xff]  }
 0x45b   :  { %3572 = vmatprep.subr.bf16.mxu0 %v5042_v32  ;;  %3654 = vmatprep.subr.bf16.mxu1 %v5045_v33  ;;  %v5119_v31 = vld [vmem:[#allocation8 + $0x248] ss:$28 sps:$4 sm:$0xff]   ;;  %v5116_v32 = vld [vmem:[#allocation8 + $0x80] ss:$28 sps:$4 sm:$0xff]  }
 0x45c   :  { %v5120_v33 = vld [vmem:[#allocation8 + $0x88] ss:$28 sps:$4 sm:$0xff]  }
 0x45e   :  { %3573 = vmatpush1.bf16.msra.mxu0 %v5040_v34  ;;  %3655 = vmatpush1.bf16.msra.mxu1 %v5043_v35  ;;  %v5123_v34 = vld [vmem:[#allocation8 + $0xbc] ss:$28 sps:$4 sm:$0xff]  }
 0x45f   :  { %3574 = vmatprep.subr.bf16.mxu0 %v5048_v36  ;;  %3656 = vmatprep.subr.bf16.mxu1 %v5051_v37  ;;  %v5124_v35 = vld [vmem:[#allocation8 + $0x280] ss:$28 sps:$4 sm:$0xff]   ;;  %v5121_v36 = vld [vmem:[#allocation8 + $0xb8] ss:$28 sps:$4 sm:$0xff]  }
 0x460   :  { %v5125_v37 = vld [vmem:[#allocation8 + $0xc0] ss:$28 sps:$4 sm:$0xff]  }
 0x462   :  { %3575 = vmatpush1.bf16.msra.mxu0 %v5046_v38  ;;  %3657 = vmatpush1.bf16.msra.mxu1 %v5049_v39  ;;  %v5128_v38 = vld [vmem:[#allocation8 + $0xf4] ss:$28 sps:$4 sm:$0xff]  }
 0x463   :  { %3576 = vmatprep.subr.bf16.mxu0 %v5054_v40  ;;  %3658 = vmatprep.subr.bf16.mxu1 %v5057_v41  ;;  %v5126_v39 = vld [vmem:[#allocation8 + $0xf0] ss:$28 sps:$4 sm:$0xff]   ;;  %v5130_v40 = vld [vmem:[#allocation8 + $0xf8] ss:$28 sps:$4 sm:$0xff]  }
 0x464   :  { %v5133_v41 = vld [vmem:[#allocation8 + $0x12c] ss:$28 sps:$4 sm:$0xff]  }
 0x466   :  { %3577 = vmatpush1.bf16.msra.mxu0 %v5052_v42  ;;  %3659 = vmatpush1.bf16.msra.mxu1 %v5055_v43  ;;  %v5134_v42 = vld [vmem:[#allocation8 + $0x2f0] ss:$28 sps:$4 sm:$0xff]   ;;  %v5131_v43 = vld [vmem:[#allocation8 + $0x128] ss:$28 sps:$4 sm:$0xff]  }
 0x467   :  { %3578 = vmatprep.subr.bf16.mxu0 %v5060_v44  ;;  %3660 = vmatprep.subr.bf16.mxu1 %v5063_v45  ;;  %v5135_v44 = vld [vmem:[#allocation8 + $0x130] ss:$28 sps:$4 sm:$0xff]   ;;  %v5138_v45 = vld [vmem:[#allocation8 + $0x164] ss:$28 sps:$4 sm:$0xff]  }
 0x46a   :  { %3579 = vmatpush1.bf16.msra.mxu0 %v5058_v46  ;;  %3661 = vmatpush1.bf16.msra.mxu1 %v5061_v47  ;;  %v5139_v46 = vld [vmem:[#allocation8 + $0x328] ss:$28 sps:$4 sm:$0xff]   ;;  %v5136_v47 = vld [vmem:[#allocation8 + $0x160] ss:$28 sps:$4 sm:$0xff]  }
 0x46b   :  { %3580 = vmatprep.subr.bf16.mxu0 %v5066_v48  ;;  %3662 = vmatprep.subr.bf16.mxu1 %v5069_v49  ;;  %v5140_v48 = vld [vmem:[#allocation8 + $0x168] ss:$28 sps:$4 sm:$0xff]   ;;  %v5143_v49 = vld [vmem:[#allocation8 + $0x19c] ss:$28 sps:$4 sm:$0xff]  }
 0x46e   :  { %3581 = vmatpush1.bf16.msra.mxu0 %v5064_v50  ;;  %3663 = vmatpush1.bf16.msra.mxu1 %v5067_v51  ;;  %v5144_v50 = vld [vmem:[#allocation8 + $0x360] ss:$28 sps:$4 sm:$0xff]   ;;  %v5141_v51 = vld [vmem:[#allocation8 + $0x198] ss:$28 sps:$4 sm:$0xff]  }
 0x46f   :  { %3582 = vmatprep.subr.bf16.mxu0 %v5072_v52  ;;  %3664 = vmatprep.subr.bf16.mxu1 %v5075_v53  ;;  %v5145_v52 = vld [vmem:[#allocation8 + $0x1a0] ss:$28 sps:$4 sm:$0xff]   ;;  %v5148_v53 = vld [vmem:[#allocation8 + $0x1d4] ss:$28 sps:$4 sm:$0xff]  }
 0x472   :  { %3583 = vmatpush1.bf16.msra.mxu0 %v5070_v54  ;;  %3665 = vmatpush1.bf16.msra.mxu1 %v5073_v55  ;;  %v5149_v54 = vld [vmem:[#allocation8 + $0x558] ss:$28 sps:$4 sm:$0xff]   ;;  %v5146_v55 = vld [vmem:[#allocation8 + $0x1d0] ss:$28 sps:$4 sm:$0xff]  }
 0x473   :  { %3584 = vmatprep.subr.bf16.mxu0 %v5078_v56  ;;  %3666 = vmatprep.subr.bf16.mxu1 %v5081_v57  ;;  %v5150_v56 = vld [vmem:[#allocation8 + $0x398] ss:$28 sps:$4 sm:$0xff]   ;;  %v5153_v57 = vld [vmem:[#allocation8 + $0x20c] ss:$28 sps:$4 sm:$0xff]  }
 0x476   :  { %3585 = vmatpush1.bf16.msra.mxu0 %v5076_v3  ;;  %3667 = vmatpush1.bf16.msra.mxu1 %v5079_v58  ;;  %v5154_v3 = vld [vmem:[#allocation8 + $0x590] ss:$28 sps:$4 sm:$0xff]   ;;  %v5151_v58 = vld [vmem:[#allocation8 + $0x208] ss:$28 sps:$4 sm:$0xff]  }
 0x477   :  { %3586 = vmatprep.subr.bf16.mxu0 %v5084_v59  ;;  %3668 = vmatprep.subr.bf16.mxu1 %v5087_v60  ;;  %v5155_v59 = vld [vmem:[#allocation8 + $0x3d0] ss:$28 sps:$4 sm:$0xff]   ;;  %v5158_v60 = vld [vmem:[#allocation8 + $0x244] ss:$28 sps:$4 sm:$0xff]  }
 0x47a   :  { %3587 = vmatpush1.bf16.msra.mxu0 %v5082_v62  ;;  %3669 = vmatpush1.bf16.msra.mxu1 %v5085_v63  ;;  %v5159_v62 = vld [vmem:[#allocation8 + $0x5c8] ss:$28 sps:$4 sm:$0xff]   ;;  %v5156_v63 = vld [vmem:[#allocation8 + $0x240] ss:$28 sps:$4 sm:$0xff]  }
 0x47b   :  { %3588 = vmatprep.subr.bf16.mxu0 %v5090_v0  ;;  %3670 = vmatprep.subr.bf16.mxu1 %v5093_v1  ;;  %v5160_v0 = vld [vmem:[#allocation8 + $0x408] ss:$28 sps:$4 sm:$0xff]   ;;  %v5163_v1 = vld [vmem:[#allocation8 + $0x27c] ss:$28 sps:$4 sm:$0xff]  }
 0x47e   :  { %3589 = vmatpush1.bf16.msra.mxu0 %v5088_v2  ;;  %3671 = vmatpush1.bf16.msra.mxu1 %v5091_v9  ;;  %v5164_v2 = vld [vmem:[#allocation8 + $0x600] ss:$28 sps:$4 sm:$0xff]   ;;  %v5161_v9 = vld [vmem:[#allocation8 + $0x278] ss:$28 sps:$4 sm:$0xff]  }
 0x47f   :  { %3590 = vmatprep.subr.bf16.mxu0 %v5096_v10  ;;  %3672 = vmatprep.subr.bf16.mxu1 %v5099_v14  ;;  %v5165_v10 = vld [vmem:[#allocation8 + $0x440] ss:$28 sps:$4 sm:$0xff]   ;;  %v5168_v14 = vld [vmem:[#allocation8 + $0x2b4] ss:$28 sps:$4 sm:$0xff]  }
 0x482   :  { %3591 = vmatpush1.bf16.msra.mxu0 %v5094_v16  ;;  %3673 = vmatpush1.bf16.msra.mxu1 %v5097_v18  ;;  %v5169_v16 = vld [vmem:[#allocation8 + $0x638] ss:$28 sps:$4 sm:$0xff]   ;;  %v5166_v18 = vld [vmem:[#allocation8 + $0x2b0] ss:$28 sps:$4 sm:$0xff]  }
 0x483   :  { %3592 = vmatprep.subr.bf16.mxu0 %v5102_v19  ;;  %3674 = vmatprep.subr.bf16.mxu1 %v5105_v21  ;;  %v5170_v19 = vld [vmem:[#allocation8 + $0x478] ss:$28 sps:$4 sm:$0xff]   ;;  %v5173_v21 = vld [vmem:[#allocation8 + $0x2ec] ss:$28 sps:$4 sm:$0xff]  }
 0x486   :  { %3593 = vmatpush1.bf16.msra.mxu0 %v5100_v6  ;;  %3675 = vmatpush1.bf16.msra.mxu1 %v5103_v22  ;;  %v5174_v6 = vld [vmem:[#allocation8 + $0x670] ss:$28 sps:$4 sm:$0xff]   ;;  %v5171_v22 = vld [vmem:[#allocation8 + $0x2e8] ss:$28 sps:$4 sm:$0xff]  }
 0x487   :  { %3685 = vmatprep.subr.bf16.mxu0 %v5108_v15  ;;  %4442 = vmatprep.subr.bf16.mxu1 %v5109_v12  ;;  %v5178_v15 = vld [vmem:[#allocation8 + $0x324] ss:$28 sps:$4 sm:$0xff]  }
 0x488   :  { %v5179_v12 = vld [vmem:[#allocation8 + $0x6a8] ss:$28 sps:$4 sm:$0xff]  }
 0x489   :  { %3595 = vmatmul.mubr.bf16.vlgmr.msra.gmra.mrb[8].mxu0 %v5595_v25  ;;  %3677 = vmatmul.mubr.bf16.vlgmr.msra.gmra.mrb[12].mxu1 %v5595_v25 }
 0x48a   :  { %3686 = vmatpush1.bf16.msra.mxu0 %v5106_v24  ;;  %3717 = vmatprep.mubr.bf16.mxu0 %v5582_v11  ;;  %v5176_v24 = vld [vmem:[#allocation8 + $0x320] ss:$28 sps:$4 sm:$0xff]  }
 0x48b   :  { %4443 = vmatpush3.bf16.msra.mxu1 %v5110_v26  ;;  %3799 = vmatprep.mubr.bf16.mxu1 %v5582_v11  ;;  %v5129_v11 = vld [vmem:[#allocation8 + $0x2b8] ss:$28 sps:$4 sm:$0xff]   ;;  %v5180_v26 = vld [vmem:[#allocation8 + $0x4e8] ss:$28 sps:$4 sm:$0xff]  }
 0x48c   :  { %3687 = vmatprep.subr.bf16.mxu0 %v5113_v28  ;;  %4444 = vmatprep.subr.bf16.mxu1 %v5114_v29  ;;  %v5183_v28 = vld [vmem:[#allocation8 + $0x35c] ss:$28 sps:$4 sm:$0xff]  }
 0x48d   :  { %v5184_v29 = vld [vmem:[#allocation8 + $0x6e0] ss:$28 sps:$4 sm:$0xff]  }
 0x48e   :  { %3688 = vmatpush1.bf16.msra.mxu0 %v5111_v27  ;;  %v5181_v27 = vld [vmem:[#allocation8 + $0x358] ss:$28 sps:$4 sm:$0xff]  }
 0x48f   :  { %4445 = vmatpush3.bf16.msra.mxu1 %v5115_v30  ;;  %3689 = vmatprep.subr.bf16.mxu0 %v5118_v13  ;;  %v5185_v30 = vld [vmem:[#allocation8 + $0x520] ss:$28 sps:$4 sm:$0xff]   ;;  %v5188_v13 = vld [vmem:[#allocation8 + $0x394] ss:$28 sps:$4 sm:$0xff]  }
 0x490   :  { %4446 = vmatprep.subr.bf16.mxu1 %v5119_v31  ;;  %v5186_v31 = vld [vmem:[#allocation8 + $0x390] ss:$28 sps:$4 sm:$0xff]  }
 0x492   :  { %3690 = vmatpush1.bf16.msra.mxu0 %v5116_v32  ;;  %v5191_v32 = vld [vmem:[#allocation8 + $0x3cc] ss:$28 sps:$4 sm:$0xff]  }
 0x493   :  { %4447 = vmatpush3.bf16.msra.mxu1 %v5120_v33  ;;  %3691 = vmatprep.subr.bf16.mxu0 %v5123_v34  ;;  %v5189_v33 = vld [vmem:[#allocation8 + $0x3c8] ss:$28 sps:$4 sm:$0xff]  }
 0x494   :  { %4448 = vmatprep.subr.bf16.mxu1 %v5124_v35  ;;  %v5194_v34 = vld [vmem:[#allocation8 + $0x404] ss:$28 sps:$4 sm:$0xff]  }
 0x495   :  { %v5192_v35 = vld [vmem:[#allocation8 + $0x400] ss:$28 sps:$4 sm:$0xff]  }
 0x496   :  { %3692 = vmatpush1.bf16.msra.mxu0 %v5121_v36  ;;  %v5197_v36 = vld [vmem:[#allocation8 + $0x43c] ss:$28 sps:$4 sm:$0xff]  }
 0x497   :  { %4449 = vmatpush3.bf16.msra.mxu1 %v5125_v37  ;;  %3693 = vmatprep.subr.bf16.mxu0 %v5128_v38  ;;  %v5195_v37 = vld [vmem:[#allocation8 + $0x438] ss:$28 sps:$4 sm:$0xff]  }
 0x498   :  { %4450 = vmatprep.subr.bf16.mxu1 %v5129_v11  ;;  %v5200_v38 = vld [vmem:[#allocation8 + $0x474] ss:$28 sps:$4 sm:$0xff]  }
 0x499   :  { %v5198_v11 = vld [vmem:[#allocation8 + $0x470] ss:$28 sps:$4 sm:$0xff]  }
 0x49a   :  { %3694 = vmatpush1.bf16.msra.mxu0 %v5126_v39  ;;  %v5201_v39 = vld [vmem:[#allocation8 + $0x4a8] ss:$28 sps:$4 sm:$0xff]  }
 0x49b   :  { %4451 = vmatpush3.bf16.msra.mxu1 %v5130_v40  ;;  %3695 = vmatprep.subr.bf16.mxu0 %v5133_v41  ;;  %v5206_v40 = vld [vmem:[#allocation8 + $0x4e4] ss:$28 sps:$4 sm:$0xff]   ;;  %v5209_v41 = vld [vmem:[#allocation8 + $0x51c] ss:$28 sps:$4 sm:$0xff]  }
 0x49c   :  { %4452 = vmatprep.subr.bf16.mxu1 %v5134_v42  ;;  %v5207_v42 = vld [vmem:[#allocation8 + $0x518] ss:$28 sps:$4 sm:$0xff]  }
 0x49e   :  { %3696 = vmatpush1.bf16.msra.mxu0 %v5131_v43  ;;  %v5212_v43 = vld [vmem:[#allocation8 + $0x554] ss:$28 sps:$4 sm:$0xff]  }
 0x49f   :  { %4453 = vmatpush3.bf16.msra.mxu1 %v5135_v44  ;;  %3697 = vmatprep.subr.bf16.mxu0 %v5138_v45  ;;  %v5210_v44 = vld [vmem:[#allocation8 + $0x550] ss:$28 sps:$4 sm:$0xff]  }
 0x4a0   :  { %4454 = vmatprep.subr.bf16.mxu1 %v5139_v46  ;;  %v5215_v45 = vld [vmem:[#allocation8 + $0x58c] ss:$28 sps:$4 sm:$0xff]  }
 0x4a1   :  { %v5213_v46 = vld [vmem:[#allocation8 + $0x588] ss:$28 sps:$4 sm:$0xff]  }
 0x4a2   :  { %3698 = vmatpush1.bf16.msra.mxu0 %v5136_v47  ;;  %v5218_v47 = vld [vmem:[#allocation8 + $0x5c4] ss:$28 sps:$4 sm:$0xff]  }
 0x4a3   :  { %4455 = vmatpush3.bf16.msra.mxu1 %v5140_v48  ;;  %3699 = vmatprep.subr.bf16.mxu0 %v5143_v49  ;;  %v5216_v48 = vld [vmem:[#allocation8 + $0x5c0] ss:$28 sps:$4 sm:$0xff]  }
 0x4a4   :  { %4456 = vmatprep.subr.bf16.mxu1 %v5144_v50  ;;  %v5221_v49 = vld [vmem:[#allocation8 + $0x5fc] ss:$28 sps:$4 sm:$0xff]  }
 0x4a5   :  { %v5219_v50 = vld [vmem:[#allocation8 + $0x5f8] ss:$28 sps:$4 sm:$0xff]  }
 0x4a6   :  { %3700 = vmatpush1.bf16.msra.mxu0 %v5141_v51  ;;  %v5224_v51 = vld [vmem:[#allocation8 + $0x634] ss:$28 sps:$4 sm:$0xff]  }
 0x4a7   :  { %4457 = vmatpush3.bf16.msra.mxu1 %v5145_v52  ;;  %3701 = vmatprep.subr.bf16.mxu0 %v5148_v53  ;;  %v5222_v52 = vld [vmem:[#allocation8 + $0x630] ss:$28 sps:$4 sm:$0xff]  }
 0x4a8   :  { %4464 = vmatprep.subr.bf16.mxu1 %v5149_v54  ;;  %v5227_v53 = vld [vmem:[#allocation8 + $0x66c] ss:$28 sps:$4 sm:$0xff]  }
 0x4a9   :  { %v5225_v54 = vld [vmem:[#allocation8 + $0x668] ss:$28 sps:$4 sm:$0xff]  }
 0x4aa   :  { %3800 = vmatmul.mubr.bf16.vlgmr.msra.gmra.mrb[16].mxu1 %v5584_v17  ;;  %3702 = vmatpush1.bf16.msra.mxu0 %v5146_v55  ;;  %v5230_v55 = vld [vmem:[#allocation8 + $0x6a4] ss:$28 sps:$4 sm:$0xff]  }
 0x4ab   :  { %4465 = vmatpush3.bf16.msra.mxu1 %v5150_v56  ;;  %3839 = vmatprep.mubr.bf16.mxu1 %v5588_v20  ;;  %v5228_v56 = vld [vmem:[#allocation8 + $0x6a0] ss:$28 sps:$4 sm:$0xff]  }
 0x4ac   :  { %3703 = vmatprep.subr.bf16.mxu0 %v5153_v57  ;;  %4466 = vmatprep.subr.bf16.mxu1 %v5154_v3  ;;  %v5233_v57 = vld [vmem:[#allocation8 + $0x6dc] ss:$28 sps:$4 sm:$0xff]  }
 0x4ad   :  { %v5231_v3 = vld [vmem:[#allocation8 + $0x6d8] ss:$28 sps:$4 sm:$0xff]  }
 0x4ae   :  { %3704 = vmatpush1.bf16.msra.mxu0 %v5151_v58  ;;  %v5610_v58 = vld [vmem:[%s5646_s8] sm:$0xff]  ;;  %s5385_s8 = smov [#allocation10]  }
 0x4af   :  { %4467 = vmatpush3.bf16.msra.mxu1 %v5155_v59  ;;  %3705 = vmatprep.subr.bf16.mxu0 %v5158_v60  ;;  %v2337_v59 = vrot.slane %v5610_v58, %v5521_v5  ;;  %v2345_v60 = vrot.slane %v5610_v58, %v5543_v61  ;;  %s3913_s3 = sshll.u32 %s5385_s8, 4  ;;  %s3914_s3 = int_to_ptr.vmem [resolvable:$true] %s3913_s3 }
 0x4b0   :  { %4468 = vmatprep.subr.bf16.mxu1 %v5159_v62  ;;  %v2341_v62 = vrot.slane %v5610_v58, %v5529_v7  ;;  %s5342_s22 = scalar_lea.vmem %s3914_s3, 896  ;;  %p5347_p2 = scmp.lt.s32.totalorder %s3914_s3, %s3914_s3 }
 0x4b1   :  { %p5343_p1 = scmp.ne.s32.totalorder %s3914_s3, %s5342_s22  ;;  %p5348_p3 = scmp.lt.s32.totalorder %s5342_s22, %s5342_s22 }
 0x4b2   :  { %3706 = vmatpush1.bf16.msra.mxu0 %v5156_v63  ;;  %v2349_v63 = vrot.slane %v5610_v58, %v5532_v8 }
 0x4b3   :  { %4469 = vmatpush3.bf16.msra.mxu1 %v5160_v0  ;;  %3707 = vmatprep.subr.bf16.mxu0 %v5163_v1  ;;  %p5349_p4 = por %p5348_p3, %p5347_p2 }
 0x4b4   :  { %4470 = vmatprep.subr.bf16.mxu1 %v5164_v2 }
 0x4b5   :  { %p5350_p5 = pnand %p5349_p4, %p5343_p1 }
 0x4b6   :  { %3708 = vmatpush1.bf16.msra.mxu0 %v5161_v9 }
 0x4b7   :  { %4471 = vmatpush3.bf16.msra.mxu1 %v5165_v10  ;;  %3709 = vmatprep.subr.bf16.mxu0 %v5168_v14 }
 0x4b8   :  { %4472 = vmatprep.subr.bf16.mxu1 %v5169_v16 }
 0x4ba   :  { %3710 = vmatpush1.bf16.msra.mxu0 %v5166_v18 }
 0x4bb   :  { %4473 = vmatpush3.bf16.msra.mxu1 %v5170_v19  ;;  %3711 = vmatprep.subr.bf16.mxu0 %v5173_v21 }
 0x4bc   :  { %4474 = vmatprep.subr.bf16.mxu1 %v5174_v6 }
 0x4be   :  { %3712 = vmatpush1.bf16.msra.mxu0 %v5171_v22 }
 0x4bf   :  { %4475 = vmatpush3.bf16.msra.mxu1 %v5175_v23  ;;  %3713 = vmatprep.subr.bf16.mxu0 %v5178_v15 }
 0x4c0   :  { %4476 = vmatprep.subr.bf16.mxu1 %v5179_v12 }
 0x4c2   :  { %3714 = vmatpush1.bf16.msra.mxu0 %v5176_v24 }
 0x4c3   :  { %4477 = vmatpush3.bf16.msra.mxu1 %v5180_v26  ;;  %3715 = vmatprep.subr.bf16.mxu0 %v5183_v28 }
 0x4c4   :  { %4478 = vmatprep.subr.bf16.mxu1 %v5184_v29 }
 0x4c6   :  { %3716 = vmatpush1.bf16.msra.mxu0 %v5181_v27 }
 0x4c7   :  { %4479 = vmatpush3.bf16.msra.mxu1 %v5185_v30  ;;  %3726 = vmatprep.subr.bf16.mxu0 %v5188_v13 }
 0x4c9   :  { %3718 = vmatmul.mubr.bf16.vlgmr.msra.gmra.mrb[12].mxu0 %v5584_v17  ;;  %v5203_v17 = vld [vmem:[#allocation8 + $0x4ac] ss:$28 sps:$4 sm:$0xff]  }
 0x4ca   :  { %3840 = vmatmul.mubr.bf16.vlgmr.msra.gmra.mrb[20].mxu1 %v5595_v25  ;;  %3727 = vmatpush1.bf16.msra.mxu0 %v5186_v31 }
 0x4cb   :  { %3758 = vmatprep.mubr.bf16.mxu0 %v5588_v20  ;;  %3728 = vmatprep.subr.bf16.mxu0 %v5191_v32  ;;  %v5204_v20 = vld [vmem:[#allocation8 + $0x4e0] ss:$28 sps:$4 sm:$0xff]  }
 0x4ce   :  { %3729 = vmatpush1.bf16.msra.mxu0 %v5189_v33 }
 0x4cf   :  { %3730 = vmatprep.subr.bf16.mxu0 %v5194_v34 }
 0x4d2   :  { %3731 = vmatpush1.bf16.msra.mxu0 %v5192_v35 }
 0x4d3   :  { %3732 = vmatprep.subr.bf16.mxu0 %v5197_v36 }
 0x4d6   :  { %3733 = vmatpush1.bf16.msra.mxu0 %v5195_v37  ;;  %v2360_v37 = vsub.s32 6, %v5518_v4 }
 0x4d7   :  { %3734 = vmatprep.subr.bf16.mxu0 %v5200_v38 }
 0x4d8   :  { %v2361_v38 = vrot.slane %v5610_v58, %v2360_v37 }
 0x4da   :  { %3735 = vmatpush1.bf16.msra.mxu0 %v5198_v11 }
 0x4db   :  { %3736 = vmatprep.subr.bf16.mxu0 %v5203_v17 }
 0x4de   :  { %3737 = vmatpush1.bf16.msra.mxu0 %v5201_v39 }
 0x4df   :  { %3738 = vmatprep.subr.bf16.mxu0 %v5206_v40 }
 0x4e2   :  { %3739 = vmatpush1.bf16.msra.mxu0 %v5204_v20 }
 0x4e3   :  { %3740 = vmatprep.subr.bf16.mxu0 %v5209_v41 }
 0x4e6   :  { %3741 = vmatpush1.bf16.msra.mxu0 %v5207_v42 }
 0x4e7   :  { %3742 = vmatprep.subr.bf16.mxu0 %v5212_v43 }
 0x4ea   :  { %3743 = vmatpush1.bf16.msra.mxu0 %v5210_v44 }
 0x4eb   :  { %3744 = vmatprep.subr.bf16.mxu0 %v5215_v45 }
 0x4ee   :  { %3745 = vmatpush1.bf16.msra.mxu0 %v5213_v46 }
 0x4ef   :  { %3746 = vmatprep.subr.bf16.mxu0 %v5218_v47  ;;  %v2352_v47 = vsub.s32 4, %v5518_v4 }
 0x4f2   :  { %3747 = vmatpush1.bf16.msra.mxu0 %v5216_v48  ;;  %v2356_v48 = vsub.s32 5, %v5518_v4 }
 0x4f3   :  { %3748 = vmatprep.subr.bf16.mxu0 %v5221_v49  ;;  %v2353_v49 = vrot.slane %v5610_v58, %v2352_v47 }
 0x4f6   :  { %3749 = vmatpush1.bf16.msra.mxu0 %v5219_v50  ;;  %v2357_v50 = vrot.slane %v5610_v58, %v2356_v48 }
 0x4f7   :  { %3750 = vmatprep.subr.bf16.mxu0 %v5224_v51 }
 0x4fa   :  { %3751 = vmatpush1.bf16.msra.mxu0 %v5222_v52 }
 0x4fb   :  { %3752 = vmatprep.subr.bf16.mxu0 %v5227_v53 }
 0x4fe   :  { %3753 = vmatpush1.bf16.msra.mxu0 %v5225_v54 }
 0x4ff   :  { %3754 = vmatprep.subr.bf16.mxu0 %v5230_v55 }
 0x502   :  { %3755 = vmatpush1.bf16.msra.mxu0 %v5228_v56 }
 0x503   :  { %3756 = vmatprep.subr.bf16.mxu0 %v5233_v57 }
 0x506   :  { %3757 = vmatpush1.bf16.msra.mxu0 %v5231_v3 }
 0x509   :  { %3759 = vmatmul.mubr.bf16.vlgmr.msra.gmra.mrb[12].mxu0 %v5595_v25 }
 0x55c   :  { %v3596_v0 = vpop.f32.mrb[8].mxu0  ;;  %v3678_v1 = vpop.f32.mrb[12].mxu1 }
 0x55d   :  { %v4554_v25 = vadd.f32 %v3596_v0, %v2337_v59  ;;  %v4556_v2 = vadd.f32 %v3678_v1, %v2345_v60  ;;  %v3598_v9 = vpop.f32.mrb[9].mxu0  ;;  %v3680_v10 = vpop.f32.mrb[13].mxu1 }
 0x55e   :  { %v4555_v14 = vadd.f32 %v3598_v9, %v2341_v62  ;;  %v4557_v16 = vadd.f32 %v3680_v10, %v2349_v63  ;;  %v3600_v18 = vpop.f32.mrb[10].mxu0  ;;  %v3682_v19 = vpop.f32.mrb[14].mxu1 }
 0x55f   :  { %v4365_v5 = vmul.f32 -1.442695, %v4554_v25  ;;  %v4367_v21 = vmul.f32 -1.442695, %v4556_v2  ;;  %v3601_v6 = vpop.f32.mrb[11].mxu0  ;;  %v3683_v61 = vpop.f32.mrb[15].mxu1 }
 0x560   :  { %v4366_v22 = vmul.f32 -1.442695, %v4555_v14  ;;  %v4368_v23 = vmul.f32 -1.442695, %v4557_v16 }
 0x561   :  { %5236 = vpow2.f32 %v4365_v5 }
 0x562   :  { %5238 = vpow2.f32 %v4367_v21 }
 0x563   :  { %5240 = vpow2.f32 %v4366_v22 }
 0x564   :  { %5242 = vpow2.f32 %v4368_v23 }
 0x56b   :  { %v5237_v7 = vpop.eup %5236 }
 0x56c   :  { %v5239_v8 = vpop.eup %5238  ;;  %v3868_v15 = vadd.f32 1.0, %v5237_v7 }
 0x56d   :  { %v5241_v12 = vpop.eup %5240  ;;  %v3870_v24 = vadd.f32 1.0, %v5239_v8 }
 0x56e   :  { %v5243_v26 = vpop.eup %5242  ;;  %5244 = vrcp.f32 %v3868_v15  ;;  %v3869_v28 = vadd.f32 1.0, %v5241_v12 }
 0x56f   :  { %5246 = vrcp.f32 %v3870_v24  ;;  %v3871_v29 = vadd.f32 1.0, %v5243_v26 }
 0x570   :  { %5248 = vrcp.f32 %v3869_v28 }
 0x571   :  { %5250 = vrcp.f32 %v3871_v29 }
 0x578   :  { %v5245_v27 = vpop.eup %5244 }
 0x579   :  { %v5247_v30 = vpop.eup %5246  ;;  %3889 = vst [vmem:[#allocation10] sm:$0xff] %v5245_v27 }
 0x57a   :  { %v5249_v13 = vpop.eup %5248  ;;  %3891 = vst [vmem:[#allocation10 + $0x10] sm:$0xff] %v5247_v30 }
 0x57b   :  { %v5251_v31 = vpop.eup %5250  ;;  %3890 = vst [vmem:[#allocation10 + $0x8] sm:$0xff] %v5249_v13 }
 0x57c   :  { %3892 = vst [vmem:[#allocation10 + $0x18] sm:$0xff] %v5251_v31 }
 0x57d   :  { %v4458_v32 = vpop.f32.mrb[16].mxu1 }
 0x57e   :  { %v4459_v33 = vpop.f32.mrb[17].mxu1 }
 0x57f   :  { %v4460_v34 = vadd.f32 %v4459_v33, %v4458_v32  ;;  %v4461_v35 = vpop.f32.mrb[18].mxu1 }
 0x580   :  { %v4462_v36 = vpop.f32.mrb[19].mxu1 }
 0x581   :  { %v3802_v39 = vadd.f32 %v4460_v34, %v2361_v38 }
 0x59d   :  { %v4480_v11 = vpop.f32.mrb[20].mxu1 }
 0x59e   :  { %v4481_v17 = vpop.f32.mrb[21].mxu1 }
 0x59f   :  { %v4482_v40 = vadd.f32 %v4481_v17, %v4480_v11  ;;  %v4483_v20 = vpop.f32.mrb[22].mxu1 }
 0x5a0   :  { %v4484_v41 = vpop.f32.mrb[23].mxu1 }
 0x5a1   :  { %v3842_v42 = vadd.f32 %v4482_v40, %v3802_v39 }
 0x5a3   :  { %v4371_v43 = vmul.f32 -1.442695, %v3842_v42 }
 0x5a5   :  { %5252 = vpow2.f32 %v4371_v43 }
 0x5af   :  { %v5253_v44 = vpop.eup %5252 }
 0x5b0   :  { %v3874_v45 = vadd.f32 1.0, %v5253_v44 }
 0x5b2   :  { %5254 = vrcp.f32 %v3874_v45 }
 0x5bc   :  { %v5255_v46 = vpop.eup %5254 }
 0x5bd   :  { %3895 = vst [vmem:[#allocation10 + $0x30] sm:$0xff] %v5255_v46 }
 0x5dc   :  { %v3760_v51 = vpop.f32.mrb[12].mxu0 }
 0x5dd   :  { %v4558_v52 = vadd.f32 %v3760_v51, %v2353_v49  ;;  %v3762_v53 = vpop.f32.mrb[13].mxu0 }
 0x5de   :  { %v4559_v54 = vadd.f32 %v3762_v53, %v2357_v50  ;;  %v3764_v55 = vpop.f32.mrb[14].mxu0 }
 0x5df   :  { %v4369_v56 = vmul.f32 -1.442695, %v4558_v52  ;;  %v3765_v57 = vpop.f32.mrb[15].mxu0 }
 0x5e0   :  { %v4370_v3 = vmul.f32 -1.442695, %v4559_v54 }
 0x5e1   :  { %5256 = vpow2.f32 %v4369_v56 }
 0x5e2   :  { %5258 = vpow2.f32 %v4370_v3 }
 0x5eb   :  { %v5257_v59 = vpop.eup %5256 }
 0x5ec   :  { %v5259_v60 = vpop.eup %5258  ;;  %v3872_v62 = vadd.f32 1.0, %v5257_v59 }
 0x5ed   :  { %v3873_v63 = vadd.f32 1.0, %v5259_v60 }
 0x5ee   :  { %5260 = vrcp.f32 %v3872_v62 }
 0x5ef   :  { %5262 = vrcp.f32 %v3873_v63 }
 0x5f8   :  { %v5261_v4 = vpop.eup %5260 }
 0x5f9   :  { %v5263_v58 = vpop.eup %5262  ;;  %3893 = vst [vmem:[#allocation10 + $0x20] sm:$0xff] %v5261_v4 }
 0x5fa   :  { %3894 = vst [vmem:[#allocation10 + $0x28] sm:$0xff] %v5263_v58 }
 0x5fb   :  { %5353 = shalt.err (!%p5350_p5)
}
 0x5fc   :  { %s5354_s29 = scalar_lea.hbm %s5649_s11, 896 }
 0x5fd   :  { %p5355_p6 = scmp.ne.s32.totalorder %s5649_s11, %s5354_s29  ;;  %p5358_p7 = scmp.lt.u32.totalorder %s5354_s29, %s5649_s11 }
 0x5ff   :  { %p5360_p8 = pnand %p5358_p7, %p5355_p6 }
 0x601   :  { %5363 = shalt.err (!%p5360_p8)
}
 0x602   :  { %3916 = dma.vmem_to_hbm [thread:$0]  %s3914_s3, 896, %s5649_s11, [#allocation4]  }
 0x603   :  { %5370 = dma.done.wait [#allocation4], 896  }
 0x604   :  { %5371 = vsyncadd [#allocation4], 4294966400 }
 0x605   :  { %3924 = vsyncpa [#allocation3], 1 }
 0x606   :  { %3925 = vsyncpa [#allocation7], 1 }
 0x607   :  { %3926 = vsyncpa [#allocation4], 1 }
 0x608   :  { %3927 = vsyncpa [#allocation5], 1 }

</bundles_post_ra>
